<compile_context>
chip_gen: v7x
topology: tpu7x:2x2x1
jax: 0.10.0
libtpu: 0.0.40
codegen_flags: <defaults>
</compile_context>

<pallas_src>
import jax
import jax.numpy as jnp
from jax.experimental import pallas as pl
from jax.experimental.pallas import tpu as pltpu


# ----------------------------------------------------------------------------
# Small-model config (SMALL shapes, consistent with the module's forward)
# ----------------------------------------------------------------------------
VOCAB = 50
TYPE_VOCAB = 2
MAX_POS = 16
BERT_DIM = 32          # args.bert_dim
N_HEADS = 2
HEAD_DIM = BERT_DIM // N_HEADS
FFN_DIM = 64
N_LAYERS = 2
HIDDEN_DIM = 32        # args.hidden_dim
MLP_LAYERS = 2         # args.mlp_layers
NUM_CLASS = 6
BATCH = 2
SEQ = 8
LN_EPS = 1e-12         # BERT layernorm eps

_VMEM = pl.BlockSpec(memory_space=pltpu.MemorySpace.VMEM)


# ----------------------------------------------------------------------------
# Fused forward kernel: everything stays resident in VMEM / vregs
# ----------------------------------------------------------------------------
def _ln(x, g, b):
    mu = jnp.mean(x, axis=-1, keepdims=True)
    xc = x - mu
    var = jnp.mean(xc * xc, axis=-1, keepdims=True)
    return xc * jax.lax.rsqrt(var + LN_EPS) * g + b


def _dot_bf16(x_f32, w_bf16):
    # bf16 MXU operands, f32 accumulation.
    return jnp.dot(x_f32.astype(jnp.bfloat16), w_bf16,
                   preferred_element_type=jnp.float32)


def _bert_erc_kernel(word_ref, type_ref, pos_ref,        # embedding slabs (f32)
                     emb_g_ref, emb_b_ref,               # (1, H)
                     wqkv_ref, bqkv_ref,                 # (L, H, 3H) bf16 / (L, 1, 3H)
                     wo_ref, bo_ref,                     # (L, H, H)  bf16 / (L, 1, H)
                     ln1g_ref, ln1b_ref,                 # (L, 1, H)
                     wi_ref, bi_ref,                     # (L, H, F)  bf16 / (L, 1, F)
                     wf_ref, bf_ref,                     # (L, F, H)  bf16 / (L, 1, H)
                     ln2g_ref, ln2b_ref,                 # (L, 1, H)
                     wpool_ref, bpool_ref,               # (H, H) bf16 / (1, H)
                     *rest):
    # rest = [mlp_w0, mlp_b0, ..., wcls, bcls, out_ref, qkv_scr, ctx_scr]
    mlp_refs = rest[:2 * MLP_LAYERS]
    wcls_ref = rest[2 * MLP_LAYERS]
    bcls_ref = rest[2 * MLP_LAYERS + 1]
    out_ref = rest[2 * MLP_LAYERS + 2]
    qkv_scr = rest[2 * MLP_LAYERS + 3]
    ctx_scr = rest[2 * MLP_LAYERS + 4]

    B, S, H, NH, HD = BATCH, SEQ, BERT_DIM, N_HEADS, HEAD_DIM

    # --- embeddings: word + type + (broadcast) pos, then layernorm ----------
    pos = pos_ref[...]                                    # (S, H)
    pos_bc = jnp.concatenate([pos] * B, axis=0)           # (B*S, H)
    emb = word_ref[...] + type_ref[...] + pos_bc
    h = _ln(emb, emb_g_ref[...], emb_b_ref[...])          # (B*S, H) f32

    # --- transformer encoder layers (fully unrolled, static loop) -----------
    for l in range(N_LAYERS):
        # fused QKV projection (scale already folded into the Q columns)
        qkv_scr[...] = _dot_bf16(h, wqkv_ref[l]) + bqkv_ref[l]   # (B*S, 3H)

        # per-(batch, head) attention on static VMEM slices; no mask
        # (matches HF BertModel default all-ones attention_mask).
        for b in range(B):
            r0 = b * S
            for hd in range(NH):
                c0 = hd * HD
                qh = qkv_scr[pl.ds(r0, S), pl.ds(c0, HD)]            # (S, HD)
                kh = qkv_scr[pl.ds(r0, S), pl.ds(H + c0, HD)]
                vh = qkv_scr[pl.ds(r0, S), pl.ds(2 * H + c0, HD)]
                s = jnp.dot(qh, kh.T, preferred_element_type=jnp.float32)
                m = jnp.max(s, axis=-1, keepdims=True)
                p = jnp.exp(s - m)
                p = p * pl.reciprocal(jnp.sum(p, axis=-1, keepdims=True),
                                      approx=True)
                ctx_scr[pl.ds(r0, S), pl.ds(c0, HD)] = jnp.dot(
                    p, vh, preferred_element_type=jnp.float32)

        ctx = ctx_scr[...]                                           # (B*S, H)
        attn_out = _dot_bf16(ctx, wo_ref[l]) + bo_ref[l]
        h1 = _ln(attn_out + h, ln1g_ref[l], ln1b_ref[l])

        ffn = _dot_bf16(h1, wi_ref[l]) + bi_ref[l]
        # TODO(synk): HF BERT default is exact erf GELU; tanh approximation used.
        ffn = 0.5 * ffn * (1.0 + jnp.tanh(
            0.7978845608028654 * (ffn + 0.044715 * ffn * ffn * ffn)))
        ffn_out = _dot_bf16(ffn, wf_ref[l]) + bf_ref[l]
        h = _ln(ffn_out + h1, ln2g_ref[l], ln2b_ref[l])

    # --- BERT pooled output: tanh(Linear(CLS))  == bert(...)[1] -------------
    cls = jnp.concatenate([h[b * S:b * S + 1, :] for b in range(B)], axis=0)
    pooled = jnp.tanh(_dot_bf16(cls, wpool_ref[...]) + bpool_ref[...])

    # --- dropout: identity at inference --------------------------------------
    # TODO(synk): training-mode dropout mask (would use pltpu.prng_* + scale)
    x = pooled

    # --- out_mlp head (all chained in-VMEM; only final logits hit HBM) ------
    for i in range(MLP_LAYERS):
        w = mlp_refs[2 * i][...]
        bm = mlp_refs[2 * i + 1][...]
        x = jnp.maximum(_dot_bf16(x, w) + bm, 0.0)
    logits = _dot_bf16(x, wcls_ref[...]) + bcls_ref[...]
    out_ref[...] = logits


# ----------------------------------------------------------------------------
# Deterministic synthetic parameters (pre-packed / pre-shaped for the kernel)
# ----------------------------------------------------------------------------
def init_params(key):
    def nrm(key, shape, scale=0.02):
        return (scale * jax.random.normal(key, shape)).astype(jnp.float32)

    keys = iter(jax.random.split(key, 128))
    qk_scale = 1.0 / (HEAD_DIM ** 0.5)

    wqkv, bqkv, wo, bo, ln1g, ln1b = [], [], [], [], [], []
    wi, bi, wf, bf, ln2g, ln2b = [], [], [], [], [], []
    for _ in range(N_LAYERS):
        Wq = nrm(next(keys), (BERT_DIM, BERT_DIM))
        Wk = nrm(next(keys), (BERT_DIM, BERT_DIM))
        Wv = nrm(next(keys), (BERT_DIM, BERT_DIM))
        bq = jnp.zeros((BERT_DIM,), jnp.float32)
        bk = jnp.zeros((BERT_DIM,), jnp.float32)
        bv = jnp.zeros((BERT_DIM,), jnp.float32)
        # fold 1/sqrt(head_dim) into the Q projection
        wqkv.append(jnp.concatenate([Wq * qk_scale, Wk, Wv], axis=1))
        bqkv.append(jnp.concatenate([bq * qk_scale, bk, bv])[None, :])
        wo.append(nrm(next(keys), (BERT_DIM, BERT_DIM)))
        bo.append(jnp.zeros((1, BERT_DIM), jnp.float32))
        ln1g.append(jnp.ones((1, BERT_DIM), jnp.float32))
        ln1b.append(jnp.zeros((1, BERT_DIM), jnp.float32))
        wi.append(nrm(next(keys), (BERT_DIM, FFN_DIM)))
        bi.append(jnp.zeros((1, FFN_DIM), jnp.float32))
        wf.append(nrm(next(keys), (FFN_DIM, BERT_DIM)))
        bf.append(jnp.zeros((1, BERT_DIM), jnp.float32))
        ln2g.append(jnp.ones((1, BERT_DIM), jnp.float32))
        ln2b.append(jnp.zeros((1, BERT_DIM), jnp.float32))

    p = {
        "word_emb": nrm(next(keys), (VOCAB, BERT_DIM)),
        "pos_emb": nrm(next(keys), (MAX_POS, BERT_DIM)),
        "type_emb": nrm(next(keys), (TYPE_VOCAB, BERT_DIM)),
        "emb_ln_g": jnp.ones((1, BERT_DIM), jnp.float32),
        "emb_ln_b": jnp.zeros((1, BERT_DIM), jnp.float32),
        # matmul weights stored bf16 (native MXU operand, half the DMA bytes)
        "Wqkv": jnp.stack(wqkv).astype(jnp.bfloat16), "bqkv": jnp.stack(bqkv),
        "Wo": jnp.stack(wo).astype(jnp.bfloat16),     "bo": jnp.stack(bo),
        "ln1_g": jnp.stack(ln1g), "ln1_b": jnp.stack(ln1b),
        "Wi": jnp.stack(wi).astype(jnp.bfloat16),     "bi": jnp.stack(bi),
        "Wf": jnp.stack(wf).astype(jnp.bfloat16),     "bf": jnp.stack(bf),
        "ln2_g": jnp.stack(ln2g), "ln2_b": jnp.stack(ln2b),
        "Wpool": nrm(next(keys), (BERT_DIM, BERT_DIM)).astype(jnp.bfloat16),
        "bpool": jnp.zeros((1, BERT_DIM), jnp.float32),
    }

    mlp = []
    in_dim = BERT_DIM
    for _ in range(MLP_LAYERS):
        mlp.append((nrm(next(keys), (in_dim, HIDDEN_DIM)).astype(jnp.bfloat16),
                    jnp.zeros((1, HIDDEN_DIM), jnp.float32)))
        in_dim = HIDDEN_DIM
    p["mlp"] = mlp
    p["Wcls"] = nrm(next(keys), (HIDDEN_DIM, NUM_CLASS)).astype(jnp.bfloat16)
    p["bcls"] = jnp.zeros((1, NUM_CLASS), jnp.float32)
    return p


# ----------------------------------------------------------------------------
# Forward: embedding gathers in JAX (glue), everything else in one kernel
# ----------------------------------------------------------------------------
def bert_erc_forward(params, content_ids, token_types):
    B, S = content_ids.shape
    H = BERT_DIM

    word = params["word_emb"][content_ids].reshape(B * S, H)
    typ = params["type_emb"][token_types].reshape(B * S, H)
    pos = params["pos_emb"][:S]

    inputs = [
        word, typ, pos,
        params["emb_ln_g"], params["emb_ln_b"],
        params["Wqkv"], params["bqkv"], params["Wo"], params["bo"],
        params["ln1_g"], params["ln1_b"],
        params["Wi"], params["bi"], params["Wf"], params["bf"],
        params["ln2_g"], params["ln2_b"],
        params["Wpool"], params["bpool"],
    ]
    for (Wm, bm) in params["mlp"]:
        inputs += [Wm, bm]
    inputs += [params["Wcls"], params["bcls"]]

    return pl.pallas_call(
        _bert_erc_kernel,
        out_shape=jax.ShapeDtypeStruct((B, NUM_CLASS), jnp.float32),
        in_specs=[_VMEM] * len(inputs),
        out_specs=_VMEM,
        scratch_shapes=[
            pltpu.VMEM((B * S, 3 * H), jnp.float32),   # fused QKV activations
            pltpu.VMEM((B * S, H), jnp.float32),       # attention context assembly
        ],
    )(*inputs)


# ----------------------------------------------------------------------------
if __name__ == "__main__":
    key = jax.random.PRNGKey(0)
    k_param, k_ids, k_types = jax.random.split(key, 3)

    params = init_params(k_param)
    content_ids = jax.random.randint(k_ids, (BATCH, SEQ), 0, VOCAB, dtype=jnp.int32)
    token_types = jax.random.randint(k_types, (BATCH, SEQ), 0, TYPE_VOCAB, dtype=jnp.int32)

    logits = jax.jit(bert_erc_forward)(params, content_ids, token_types)
    jax.block_until_ready(logits)
    assert logits.shape == (BATCH, NUM_CLASS)
    print("KERNEL_OK")
</pallas_src>

<mosaic_0001>
module attributes {stable_mosaic.version = 11 : i64} {
  func.func @_bert_erc_kernel(%arg0: memref<16x32xf32, #tpu.memory_space<vmem>>, %arg1: memref<16x32xf32, #tpu.memory_space<vmem>>, %arg2: memref<8x32xf32, #tpu.memory_space<vmem>>, %arg3: memref<1x32xf32, #tpu.memory_space<vmem>>, %arg4: memref<1x32xf32, #tpu.memory_space<vmem>>, %arg5: memref<2x32x96xbf16, #tpu.memory_space<vmem>>, %arg6: memref<2x1x96xf32, #tpu.memory_space<vmem>>, %arg7: memref<2x32x32xbf16, #tpu.memory_space<vmem>>, %arg8: memref<2x1x32xf32, #tpu.memory_space<vmem>>, %arg9: memref<2x1x32xf32, #tpu.memory_space<vmem>>, %arg10: memref<2x1x32xf32, #tpu.memory_space<vmem>>, %arg11: memref<2x32x64xbf16, #tpu.memory_space<vmem>>, %arg12: memref<2x1x64xf32, #tpu.memory_space<vmem>>, %arg13: memref<2x64x32xbf16, #tpu.memory_space<vmem>>, %arg14: memref<2x1x32xf32, #tpu.memory_space<vmem>>, %arg15: memref<2x1x32xf32, #tpu.memory_space<vmem>>, %arg16: memref<2x1x32xf32, #tpu.memory_space<vmem>>, %arg17: memref<32x32xbf16, #tpu.memory_space<vmem>>, %arg18: memref<1x32xf32, #tpu.memory_space<vmem>>, %arg19: memref<32x32xbf16, #tpu.memory_space<vmem>>, %arg20: memref<1x32xf32, #tpu.memory_space<vmem>>, %arg21: memref<32x32xbf16, #tpu.memory_space<vmem>>, %arg22: memref<1x32xf32, #tpu.memory_space<vmem>>, %arg23: memref<32x6xbf16, #tpu.memory_space<vmem>>, %arg24: memref<1x6xf32, #tpu.memory_space<vmem>>, %arg25: memref<2x6xf32, #tpu.memory_space<vmem>>, %arg26: memref<16x96xf32, #tpu.memory_space<vmem>>, %arg27: memref<16x32xf32, #tpu.memory_space<vmem>>) attributes {dimension_semantics = [], scalar_prefetch = 0 : i64, scratch_operands = 2 : i64, tpu.core_type = #tpu.core_type<tc>} {
    %c0 = arith.constant 0 : index
    %c0_0 = arith.constant 0 : index
    %0 = vector.load %arg2[%c0, %c0_0] : memref<8x32xf32, #tpu.memory_space<vmem>>, vector<8x32xf32>
    %1 = tpu.concatenate %0, %0 in 0 : vector<8x32xf32>, vector<8x32xf32> -> vector<16x32xf32>
    %c0_1 = arith.constant 0 : index
    %c0_2 = arith.constant 0 : index
    %2 = vector.load %arg0[%c0_1, %c0_2] : memref<16x32xf32, #tpu.memory_space<vmem>>, vector<16x32xf32>
    %c0_3 = arith.constant 0 : index
    %c0_4 = arith.constant 0 : index
    %3 = vector.load %arg1[%c0_3, %c0_4] : memref<16x32xf32, #tpu.memory_space<vmem>>, vector<16x32xf32>
    %4 = arith.addf %2, %3 : vector<16x32xf32>
    %5 = arith.addf %4, %1 : vector<16x32xf32>
    %c0_5 = arith.constant 0 : index
    %c0_6 = arith.constant 0 : index
    %6 = vector.load %arg3[%c0_5, %c0_6] : memref<1x32xf32, #tpu.memory_space<vmem>>, vector<1x32xf32>
    %c0_7 = arith.constant 0 : index
    %c0_8 = arith.constant 0 : index
    %7 = vector.load %arg4[%c0_7, %c0_8] : memref<1x32xf32, #tpu.memory_space<vmem>>, vector<1x32xf32>
    %cst = arith.constant dense<0.000000e+00> : vector<16xf32>
    %8 = vector.multi_reduction <add>, %5, %cst [1] : vector<16x32xf32> to vector<16xf32>
    %9 = vector.shape_cast %8 : vector<16xf32> to vector<16x1xf32>
    %cst_9 = arith.constant 3.200000e+01 : f32
    %10 = vector.broadcast %cst_9 : f32 to vector<16x1xf32>
    %11 = arith.divf %9, %10 : vector<16x1xf32>
    %12 = vector.broadcast %11 : vector<16x1xf32> to vector<16x32xf32>
    %13 = arith.subf %5, %12 : vector<16x32xf32>
    %14 = arith.mulf %13, %13 : vector<16x32xf32>
    %cst_10 = arith.constant dense<0.000000e+00> : vector<16xf32>
    %15 = vector.multi_reduction <add>, %14, %cst_10 [1] : vector<16x32xf32> to vector<16xf32>
    %16 = vector.shape_cast %15 : vector<16xf32> to vector<16x1xf32>
    %cst_11 = arith.constant 3.200000e+01 : f32
    %17 = vector.broadcast %cst_11 : f32 to vector<16x1xf32>
    %18 = arith.divf %16, %17 : vector<16x1xf32>
    %cst_12 = arith.constant 9.99999996E-13 : f32
    %19 = vector.broadcast %cst_12 : f32 to vector<16x1xf32>
    %20 = arith.addf %18, %19 : vector<16x1xf32>
    %21 = math.rsqrt %20 : vector<16x1xf32>
    %22 = vector.broadcast %21 : vector<16x1xf32> to vector<16x32xf32>
    %23 = arith.mulf %13, %22 : vector<16x32xf32>
    %24 = vector.broadcast %6 : vector<1x32xf32> to vector<16x32xf32>
    %25 = arith.mulf %23, %24 : vector<16x32xf32>
    %26 = vector.broadcast %7 : vector<1x32xf32> to vector<16x32xf32>
    %27 = arith.addf %25, %26 : vector<16x32xf32>
    %c0_13 = arith.constant 0 : index
    %c0_14 = arith.constant 0 : index
    %c0_15 = arith.constant 0 : index
    %28 = vector.load %arg5[%c0_13, %c0_14, %c0_15] : memref<2x32x96xbf16, #tpu.memory_space<vmem>>, vector<1x32x96xbf16>
    %29 = vector.shape_cast %28 : vector<1x32x96xbf16> to vector<32x96xbf16>
    %30 = arith.truncf %27 : vector<16x32xf32> to vector<16x32xbf16>
    %cst_16 = arith.constant dense<0.000000e+00> : vector<16x96xf32>
    %31 = tpu.matmul %30, %29, %cst_16 {dimension_numbers = #tpu.dot_dimension_numbers<[1], [0], [0], [1], [0, 0, 1, 1], [], []>} : vector<16x32xbf16>, vector<32x96xbf16>, vector<16x96xf32> -> vector<16x96xf32>
    %c0_17 = arith.constant 0 : index
    %c0_18 = arith.constant 0 : index
    %c0_19 = arith.constant 0 : index
    %32 = vector.load %arg6[%c0_17, %c0_18, %c0_19] : memref<2x1x96xf32, #tpu.memory_space<vmem>>, vector<1x1x96xf32>
    %33 = vector.shape_cast %32 : vector<1x1x96xf32> to vector<1x96xf32>
    %34 = vector.broadcast %33 : vector<1x96xf32> to vector<16x96xf32>
    %35 = arith.addf %31, %34 : vector<16x96xf32>
    %c0_20 = arith.constant 0 : index
    %c0_21 = arith.constant 0 : index
    %36 = vector.load %arg26[%c0_20, %c0_21] : memref<16x96xf32, #tpu.memory_space<vmem>>, vector<16x96xf32>
    tpu.vector_store %arg26[%c0_20, %c0_21], %35 {strides = array<i32>} : memref<16x96xf32, #tpu.memory_space<vmem>>, vector<16x96xf32>,
    %c0_22 = arith.constant 0 : index
    %c0_23 = arith.constant 0 : index
    %37 = vector.load %arg26[%c0_22, %c0_23] : memref<16x96xf32, #tpu.memory_space<vmem>>, vector<8x16xf32>
    %c0_24 = arith.constant 0 : index
    %c32 = arith.constant 32 : index
    %38 = vector.load %arg26[%c0_24, %c32] : memref<16x96xf32, #tpu.memory_space<vmem>>, vector<8x16xf32>
    %c0_25 = arith.constant 0 : index
    %c64 = arith.constant 64 : index
    %39 = vector.load %arg26[%c0_25, %c64] : memref<16x96xf32, #tpu.memory_space<vmem>>, vector<8x16xf32>
    %40 = tpu.transpose %38, [1, 0] : vector<8x16xf32> -> vector<16x8xf32>
    %cst_26 = arith.constant dense<0.000000e+00> : vector<8x8xf32>
    %41 = tpu.matmul %37, %40, %cst_26 {dimension_numbers = #tpu.dot_dimension_numbers<[1], [0], [0], [1], [0, 0, 1, 1], [], []>} : vector<8x16xf32>, vector<16x8xf32>, vector<8x8xf32> -> vector<8x8xf32>
    %cst_27 = arith.constant dense<0xFF800000> : vector<8xf32>
    %42 = vector.multi_reduction <maximumf>, %41, %cst_27 [1] : vector<8x8xf32> to vector<8xf32>
    %43 = vector.shape_cast %42 : vector<8xf32> to vector<8x1xf32>
    %44 = vector.broadcast %43 : vector<8x1xf32> to vector<8x8xf32>
    %45 = arith.subf %41, %44 : vector<8x8xf32>
    %46 = math.exp %45 : vector<8x8xf32>
    %cst_28 = arith.constant dense<0.000000e+00> : vector<8xf32>
    %47 = vector.multi_reduction <add>, %46, %cst_28 [1] : vector<8x8xf32> to vector<8xf32>
    %48 = vector.shape_cast %47 : vector<8xf32> to vector<8x1xf32>
    %49 = tpu.reciprocal %48 {approx = true} : vector<8x1xf32> -> vector<8x1xf32>
    %50 = vector.broadcast %49 : vector<8x1xf32> to vector<8x8xf32>
    %51 = arith.mulf %46, %50 : vector<8x8xf32>
    %cst_29 = arith.constant dense<0.000000e+00> : vector<8x16xf32>
    %52 = tpu.matmul %51, %39, %cst_29 {dimension_numbers = #tpu.dot_dimension_numbers<[1], [0], [0], [1], [0, 0, 1, 1], [], []>} : vector<8x8xf32>, vector<8x16xf32>, vector<8x16xf32> -> vector<8x16xf32>
    %c0_30 = arith.constant 0 : index
    %c0_31 = arith.constant 0 : index
    %53 = vector.load %arg27[%c0_30, %c0_31] : memref<16x32xf32, #tpu.memory_space<vmem>>, vector<8x16xf32>
    tpu.vector_store %arg27[%c0_30, %c0_31], %52 {strides = array<i32>} : memref<16x32xf32, #tpu.memory_space<vmem>>, vector<8x16xf32>,
    %c0_32 = arith.constant 0 : index
    %c16 = arith.constant 16 : index
    %54 = vector.load %arg26[%c0_32, %c16] : memref<16x96xf32, #tpu.memory_space<vmem>>, vector<8x16xf32>
    %c0_33 = arith.constant 0 : index
    %c48 = arith.constant 48 : index
    %55 = vector.load %arg26[%c0_33, %c48] : memref<16x96xf32, #tpu.memory_space<vmem>>, vector<8x16xf32>
    %c0_34 = arith.constant 0 : index
    %c80 = arith.constant 80 : index
    %56 = vector.load %arg26[%c0_34, %c80] : memref<16x96xf32, #tpu.memory_space<vmem>>, vector<8x16xf32>
    %57 = tpu.transpose %55, [1, 0] : vector<8x16xf32> -> vector<16x8xf32>
    %cst_35 = arith.constant dense<0.000000e+00> : vector<8x8xf32>
    %58 = tpu.matmul %54, %57, %cst_35 {dimension_numbers = #tpu.dot_dimension_numbers<[1], [0], [0], [1], [0, 0, 1, 1], [], []>} : vector<8x16xf32>, vector<16x8xf32>, vector<8x8xf32> -> vector<8x8xf32>
    %cst_36 = arith.constant dense<0xFF800000> : vector<8xf32>
    %59 = vector.multi_reduction <maximumf>, %58, %cst_36 [1] : vector<8x8xf32> to vector<8xf32>
    %60 = vector.shape_cast %59 : vector<8xf32> to vector<8x1xf32>
    %61 = vector.broadcast %60 : vector<8x1xf32> to vector<8x8xf32>
    %62 = arith.subf %58, %61 : vector<8x8xf32>
    %63 = math.exp %62 : vector<8x8xf32>
    %cst_37 = arith.constant dense<0.000000e+00> : vector<8xf32>
    %64 = vector.multi_reduction <add>, %63, %cst_37 [1] : vector<8x8xf32> to vector<8xf32>
    %65 = vector.shape_cast %64 : vector<8xf32> to vector<8x1xf32>
    %66 = tpu.reciprocal %65 {approx = true} : vector<8x1xf32> -> vector<8x1xf32>
    %67 = vector.broadcast %66 : vector<8x1xf32> to vector<8x8xf32>
    %68 = arith.mulf %63, %67 : vector<8x8xf32>
    %cst_38 = arith.constant dense<0.000000e+00> : vector<8x16xf32>
    %69 = tpu.matmul %68, %56, %cst_38 {dimension_numbers = #tpu.dot_dimension_numbers<[1], [0], [0], [1], [0, 0, 1, 1], [], []>} : vector<8x8xf32>, vector<8x16xf32>, vector<8x16xf32> -> vector<8x16xf32>
    %c0_39 = arith.constant 0 : index
    %c16_40 = arith.constant 16 : index
    %70 = vector.load %arg27[%c0_39, %c16_40] : memref<16x32xf32, #tpu.memory_space<vmem>>, vector<8x16xf32>
    tpu.vector_store %arg27[%c0_39, %c16_40], %69 {strides = array<i32>} : memref<16x32xf32, #tpu.memory_space<vmem>>, vector<8x16xf32>,
    %c8 = arith.constant 8 : index
    %c0_41 = arith.constant 0 : index
    %71 = vector.load %arg26[%c8, %c0_41] : memref<16x96xf32, #tpu.memory_space<vmem>>, vector<8x16xf32>
    %c8_42 = arith.constant 8 : index
    %c32_43 = arith.constant 32 : index
    %72 = vector.load %arg26[%c8_42, %c32_43] : memref<16x96xf32, #tpu.memory_space<vmem>>, vector<8x16xf32>
    %c8_44 = arith.constant 8 : index
    %c64_45 = arith.constant 64 : index
    %73 = vector.load %arg26[%c8_44, %c64_45] : memref<16x96xf32, #tpu.memory_space<vmem>>, vector<8x16xf32>
    %74 = tpu.transpose %72, [1, 0] : vector<8x16xf32> -> vector<16x8xf32>
    %cst_46 = arith.constant dense<0.000000e+00> : vector<8x8xf32>
    %75 = tpu.matmul %71, %74, %cst_46 {dimension_numbers = #tpu.dot_dimension_numbers<[1], [0], [0], [1], [0, 0, 1, 1], [], []>} : vector<8x16xf32>, vector<16x8xf32>, vector<8x8xf32> -> vector<8x8xf32>
    %cst_47 = arith.constant dense<0xFF800000> : vector<8xf32>
    %76 = vector.multi_reduction <maximumf>, %75, %cst_47 [1] : vector<8x8xf32> to vector<8xf32>
    %77 = vector.shape_cast %76 : vector<8xf32> to vector<8x1xf32>
    %78 = vector.broadcast %77 : vector<8x1xf32> to vector<8x8xf32>
    %79 = arith.subf %75, %78 : vector<8x8xf32>
    %80 = math.exp %79 : vector<8x8xf32>
    %cst_48 = arith.constant dense<0.000000e+00> : vector<8xf32>
    %81 = vector.multi_reduction <add>, %80, %cst_48 [1] : vector<8x8xf32> to vector<8xf32>
    %82 = vector.shape_cast %81 : vector<8xf32> to vector<8x1xf32>
    %83 = tpu.reciprocal %82 {approx = true} : vector<8x1xf32> -> vector<8x1xf32>
    %84 = vector.broadcast %83 : vector<8x1xf32> to vector<8x8xf32>
    %85 = arith.mulf %80, %84 : vector<8x8xf32>
    %cst_49 = arith.constant dense<0.000000e+00> : vector<8x16xf32>
    %86 = tpu.matmul %85, %73, %cst_49 {dimension_numbers = #tpu.dot_dimension_numbers<[1], [0], [0], [1], [0, 0, 1, 1], [], []>} : vector<8x8xf32>, vector<8x16xf32>, vector<8x16xf32> -> vector<8x16xf32>
    %c8_50 = arith.constant 8 : index
    %c0_51 = arith.constant 0 : index
    %87 = vector.load %arg27[%c8_50, %c0_51] : memref<16x32xf32, #tpu.memory_space<vmem>>, vector<8x16xf32>
    tpu.vector_store %arg27[%c8_50, %c0_51], %86 {strides = array<i32>} : memref<16x32xf32, #tpu.memory_space<vmem>>, vector<8x16xf32>,
    %c8_52 = arith.constant 8 : index
    %c16_53 = arith.constant 16 : index
    %88 = vector.load %arg26[%c8_52, %c16_53] : memref<16x96xf32, #tpu.memory_space<vmem>>, vector<8x16xf32>
    %c8_54 = arith.constant 8 : index
    %c48_55 = arith.constant 48 : index
    %89 = vector.load %arg26[%c8_54, %c48_55] : memref<16x96xf32, #tpu.memory_space<vmem>>, vector<8x16xf32>
    %c8_56 = arith.constant 8 : index
    %c80_57 = arith.constant 80 : index
    %90 = vector.load %arg26[%c8_56, %c80_57] : memref<16x96xf32, #tpu.memory_space<vmem>>, vector<8x16xf32>
    %91 = tpu.transpose %89, [1, 0] : vector<8x16xf32> -> vector<16x8xf32>
    %cst_58 = arith.constant dense<0.000000e+00> : vector<8x8xf32>
    %92 = tpu.matmul %88, %91, %cst_58 {dimension_numbers = #tpu.dot_dimension_numbers<[1], [0], [0], [1], [0, 0, 1, 1], [], []>} : vector<8x16xf32>, vector<16x8xf32>, vector<8x8xf32> -> vector<8x8xf32>
    %cst_59 = arith.constant dense<0xFF800000> : vector<8xf32>
    %93 = vector.multi_reduction <maximumf>, %92, %cst_59 [1] : vector<8x8xf32> to vector<8xf32>
    %94 = vector.shape_cast %93 : vector<8xf32> to vector<8x1xf32>
    %95 = vector.broadcast %94 : vector<8x1xf32> to vector<8x8xf32>
    %96 = arith.subf %92, %95 : vector<8x8xf32>
    %97 = math.exp %96 : vector<8x8xf32>
    %cst_60 = arith.constant dense<0.000000e+00> : vector<8xf32>
    %98 = vector.multi_reduction <add>, %97, %cst_60 [1] : vector<8x8xf32> to vector<8xf32>
    %99 = vector.shape_cast %98 : vector<8xf32> to vector<8x1xf32>
    %100 = tpu.reciprocal %99 {approx = true} : vector<8x1xf32> -> vector<8x1xf32>
    %101 = vector.broadcast %100 : vector<8x1xf32> to vector<8x8xf32>
    %102 = arith.mulf %97, %101 : vector<8x8xf32>
    %cst_61 = arith.constant dense<0.000000e+00> : vector<8x16xf32>
    %103 = tpu.matmul %102, %90, %cst_61 {dimension_numbers = #tpu.dot_dimension_numbers<[1], [0], [0], [1], [0, 0, 1, 1], [], []>} : vector<8x8xf32>, vector<8x16xf32>, vector<8x16xf32> -> vector<8x16xf32>
    %c8_62 = arith.constant 8 : index
    %c16_63 = arith.constant 16 : index
    %104 = vector.load %arg27[%c8_62, %c16_63] : memref<16x32xf32, #tpu.memory_space<vmem>>, vector<8x16xf32>
    tpu.vector_store %arg27[%c8_62, %c16_63], %103 {strides = array<i32>} : memref<16x32xf32, #tpu.memory_space<vmem>>, vector<8x16xf32>,
    %c0_64 = arith.constant 0 : index
    %c0_65 = arith.constant 0 : index
    %105 = vector.load %arg27[%c0_64, %c0_65] : memref<16x32xf32, #tpu.memory_space<vmem>>, vector<16x32xf32>
    %c0_66 = arith.constant 0 : index
    %c0_67 = arith.constant 0 : index
    %c0_68 = arith.constant 0 : index
    %106 = vector.load %arg7[%c0_66, %c0_67, %c0_68] : memref<2x32x32xbf16, #tpu.memory_space<vmem>>, vector<1x32x32xbf16>
    %107 = vector.shape_cast %106 : vector<1x32x32xbf16> to vector<32x32xbf16>
    %108 = arith.truncf %105 : vector<16x32xf32> to vector<16x32xbf16>
    %cst_69 = arith.constant dense<0.000000e+00> : vector<16x32xf32>
    %109 = tpu.matmul %108, %107, %cst_69 {dimension_numbers = #tpu.dot_dimension_numbers<[1], [0], [0], [1], [0, 0, 1, 1], [], []>} : vector<16x32xbf16>, vector<32x32xbf16>, vector<16x32xf32> -> vector<16x32xf32>
    %c0_70 = arith.constant 0 : index
    %c0_71 = arith.constant 0 : index
    %c0_72 = arith.constant 0 : index
    %110 = vector.load %arg8[%c0_70, %c0_71, %c0_72] : memref<2x1x32xf32, #tpu.memory_space<vmem>>, vector<1x1x32xf32>
    %111 = vector.shape_cast %110 : vector<1x1x32xf32> to vector<1x32xf32>
    %112 = vector.broadcast %111 : vector<1x32xf32> to vector<16x32xf32>
    %113 = arith.addf %109, %112 : vector<16x32xf32>
    %114 = arith.addf %113, %27 : vector<16x32xf32>
    %c0_73 = arith.constant 0 : index
    %c0_74 = arith.constant 0 : index
    %c0_75 = arith.constant 0 : index
    %115 = vector.load %arg9[%c0_73, %c0_74, %c0_75] : memref<2x1x32xf32, #tpu.memory_space<vmem>>, vector<1x1x32xf32>
    %116 = vector.shape_cast %115 : vector<1x1x32xf32> to vector<1x32xf32>
    %c0_76 = arith.constant 0 : index
    %c0_77 = arith.constant 0 : index
    %c0_78 = arith.constant 0 : index
    %117 = vector.load %arg10[%c0_76, %c0_77, %c0_78] : memref<2x1x32xf32, #tpu.memory_space<vmem>>, vector<1x1x32xf32>
    %118 = vector.shape_cast %117 : vector<1x1x32xf32> to vector<1x32xf32>
    %cst_79 = arith.constant dense<0.000000e+00> : vector<16xf32>
    %119 = vector.multi_reduction <add>, %114, %cst_79 [1] : vector<16x32xf32> to vector<16xf32>
    %120 = vector.shape_cast %119 : vector<16xf32> to vector<16x1xf32>
    %cst_80 = arith.constant 3.200000e+01 : f32
    %121 = vector.broadcast %cst_80 : f32 to vector<16x1xf32>
    %122 = arith.divf %120, %121 : vector<16x1xf32>
    %123 = vector.broadcast %122 : vector<16x1xf32> to vector<16x32xf32>
    %124 = arith.subf %114, %123 : vector<16x32xf32>
    %125 = arith.mulf %124, %124 : vector<16x32xf32>
    %cst_81 = arith.constant dense<0.000000e+00> : vector<16xf32>
    %126 = vector.multi_reduction <add>, %125, %cst_81 [1] : vector<16x32xf32> to vector<16xf32>
    %127 = vector.shape_cast %126 : vector<16xf32> to vector<16x1xf32>
    %cst_82 = arith.constant 3.200000e+01 : f32
    %128 = vector.broadcast %cst_82 : f32 to vector<16x1xf32>
    %129 = arith.divf %127, %128 : vector<16x1xf32>
    %cst_83 = arith.constant 9.99999996E-13 : f32
    %130 = vector.broadcast %cst_83 : f32 to vector<16x1xf32>
    %131 = arith.addf %129, %130 : vector<16x1xf32>
    %132 = math.rsqrt %131 : vector<16x1xf32>
    %133 = vector.broadcast %132 : vector<16x1xf32> to vector<16x32xf32>
    %134 = arith.mulf %124, %133 : vector<16x32xf32>
    %135 = vector.broadcast %116 : vector<1x32xf32> to vector<16x32xf32>
    %136 = arith.mulf %134, %135 : vector<16x32xf32>
    %137 = vector.broadcast %118 : vector<1x32xf32> to vector<16x32xf32>
    %138 = arith.addf %136, %137 : vector<16x32xf32>
    %c0_84 = arith.constant 0 : index
    %c0_85 = arith.constant 0 : index
    %c0_86 = arith.constant 0 : index
    %139 = vector.load %arg11[%c0_84, %c0_85, %c0_86] : memref<2x32x64xbf16, #tpu.memory_space<vmem>>, vector<1x32x64xbf16>
    %140 = vector.shape_cast %139 : vector<1x32x64xbf16> to vector<32x64xbf16>
    %141 = arith.truncf %138 : vector<16x32xf32> to vector<16x32xbf16>
    %cst_87 = arith.constant dense<0.000000e+00> : vector<16x64xf32>
    %142 = tpu.matmul %141, %140, %cst_87 {dimension_numbers = #tpu.dot_dimension_numbers<[1], [0], [0], [1], [0, 0, 1, 1], [], []>} : vector<16x32xbf16>, vector<32x64xbf16>, vector<16x64xf32> -> vector<16x64xf32>
    %c0_88 = arith.constant 0 : index
    %c0_89 = arith.constant 0 : index
    %c0_90 = arith.constant 0 : index
    %143 = vector.load %arg12[%c0_88, %c0_89, %c0_90] : memref<2x1x64xf32, #tpu.memory_space<vmem>>, vector<1x1x64xf32>
    %144 = vector.shape_cast %143 : vector<1x1x64xf32> to vector<1x64xf32>
    %145 = vector.broadcast %144 : vector<1x64xf32> to vector<16x64xf32>
    %146 = arith.addf %142, %145 : vector<16x64xf32>
    %cst_91 = arith.constant 5.000000e-01 : f32
    %147 = vector.broadcast %cst_91 : f32 to vector<16x64xf32>
    %148 = arith.mulf %147, %146 : vector<16x64xf32>
    %cst_92 = arith.constant 4.471500e-02 : f32
    %149 = vector.broadcast %cst_92 : f32 to vector<16x64xf32>
    %150 = arith.mulf %149, %146 : vector<16x64xf32>
    %151 = arith.mulf %150, %146 : vector<16x64xf32>
    %152 = arith.mulf %151, %146 : vector<16x64xf32>
    %153 = arith.addf %146, %152 : vector<16x64xf32>
    %cst_93 = arith.constant 0.797884583 : f32
    %154 = vector.broadcast %cst_93 : f32 to vector<16x64xf32>
    %155 = arith.mulf %154, %153 : vector<16x64xf32>
    %156 = math.tanh %155 : vector<16x64xf32>
    %cst_94 = arith.constant 1.000000e+00 : f32
    %157 = vector.broadcast %cst_94 : f32 to vector<16x64xf32>
    %158 = arith.addf %157, %156 : vector<16x64xf32>
    %159 = arith.mulf %148, %158 : vector<16x64xf32>
    %c0_95 = arith.constant 0 : index
    %c0_96 = arith.constant 0 : index
    %c0_97 = arith.constant 0 : index
    %160 = vector.load %arg13[%c0_95, %c0_96, %c0_97] : memref<2x64x32xbf16, #tpu.memory_space<vmem>>, vector<1x64x32xbf16>
    %161 = vector.shape_cast %160 : vector<1x64x32xbf16> to vector<64x32xbf16>
    %162 = arith.truncf %159 : vector<16x64xf32> to vector<16x64xbf16>
    %cst_98 = arith.constant dense<0.000000e+00> : vector<16x32xf32>
    %163 = tpu.matmul %162, %161, %cst_98 {dimension_numbers = #tpu.dot_dimension_numbers<[1], [0], [0], [1], [0, 0, 1, 1], [], []>} : vector<16x64xbf16>, vector<64x32xbf16>, vector<16x32xf32> -> vector<16x32xf32>
    %c0_99 = arith.constant 0 : index
    %c0_100 = arith.constant 0 : index
    %c0_101 = arith.constant 0 : index
    %164 = vector.load %arg14[%c0_99, %c0_100, %c0_101] : memref<2x1x32xf32, #tpu.memory_space<vmem>>, vector<1x1x32xf32>
    %165 = vector.shape_cast %164 : vector<1x1x32xf32> to vector<1x32xf32>
    %166 = vector.broadcast %165 : vector<1x32xf32> to vector<16x32xf32>
    %167 = arith.addf %163, %166 : vector<16x32xf32>
    %168 = arith.addf %167, %138 : vector<16x32xf32>
    %c0_102 = arith.constant 0 : index
    %c0_103 = arith.constant 0 : index
    %c0_104 = arith.constant 0 : index
    %169 = vector.load %arg15[%c0_102, %c0_103, %c0_104] : memref<2x1x32xf32, #tpu.memory_space<vmem>>, vector<1x1x32xf32>
    %170 = vector.shape_cast %169 : vector<1x1x32xf32> to vector<1x32xf32>
    %c0_105 = arith.constant 0 : index
    %c0_106 = arith.constant 0 : index
    %c0_107 = arith.constant 0 : index
    %171 = vector.load %arg16[%c0_105, %c0_106, %c0_107] : memref<2x1x32xf32, #tpu.memory_space<vmem>>, vector<1x1x32xf32>
    %172 = vector.shape_cast %171 : vector<1x1x32xf32> to vector<1x32xf32>
    %cst_108 = arith.constant dense<0.000000e+00> : vector<16xf32>
    %173 = vector.multi_reduction <add>, %168, %cst_108 [1] : vector<16x32xf32> to vector<16xf32>
    %174 = vector.shape_cast %173 : vector<16xf32> to vector<16x1xf32>
    %cst_109 = arith.constant 3.200000e+01 : f32
    %175 = vector.broadcast %cst_109 : f32 to vector<16x1xf32>
    %176 = arith.divf %174, %175 : vector<16x1xf32>
    %177 = vector.broadcast %176 : vector<16x1xf32> to vector<16x32xf32>
    %178 = arith.subf %168, %177 : vector<16x32xf32>
    %179 = arith.mulf %178, %178 : vector<16x32xf32>
    %cst_110 = arith.constant dense<0.000000e+00> : vector<16xf32>
    %180 = vector.multi_reduction <add>, %179, %cst_110 [1] : vector<16x32xf32> to vector<16xf32>
    %181 = vector.shape_cast %180 : vector<16xf32> to vector<16x1xf32>
    %cst_111 = arith.constant 3.200000e+01 : f32
    %182 = vector.broadcast %cst_111 : f32 to vector<16x1xf32>
    %183 = arith.divf %181, %182 : vector<16x1xf32>
    %cst_112 = arith.constant 9.99999996E-13 : f32
    %184 = vector.broadcast %cst_112 : f32 to vector<16x1xf32>
    %185 = arith.addf %183, %184 : vector<16x1xf32>
    %186 = math.rsqrt %185 : vector<16x1xf32>
    %187 = vector.broadcast %186 : vector<16x1xf32> to vector<16x32xf32>
    %188 = arith.mulf %178, %187 : vector<16x32xf32>
    %189 = vector.broadcast %170 : vector<1x32xf32> to vector<16x32xf32>
    %190 = arith.mulf %188, %189 : vector<16x32xf32>
    %191 = vector.broadcast %172 : vector<1x32xf32> to vector<16x32xf32>
    %192 = arith.addf %190, %191 : vector<16x32xf32>
    %c1 = arith.constant 1 : index
    %c0_113 = arith.constant 0 : index
    %c0_114 = arith.constant 0 : index
    %193 = vector.load %arg5[%c1, %c0_113, %c0_114] : memref<2x32x96xbf16, #tpu.memory_space<vmem>>, vector<1x32x96xbf16>
    %194 = vector.shape_cast %193 : vector<1x32x96xbf16> to vector<32x96xbf16>
    %195 = arith.truncf %192 : vector<16x32xf32> to vector<16x32xbf16>
    %cst_115 = arith.constant dense<0.000000e+00> : vector<16x96xf32>
    %196 = tpu.matmul %195, %194, %cst_115 {dimension_numbers = #tpu.dot_dimension_numbers<[1], [0], [0], [1], [0, 0, 1, 1], [], []>} : vector<16x32xbf16>, vector<32x96xbf16>, vector<16x96xf32> -> vector<16x96xf32>
    %c1_116 = arith.constant 1 : index
    %c0_117 = arith.constant 0 : index
    %c0_118 = arith.constant 0 : index
    %197 = vector.load %arg6[%c1_116, %c0_117, %c0_118] : memref<2x1x96xf32, #tpu.memory_space<vmem>>, vector<1x1x96xf32>
    %198 = vector.shape_cast %197 : vector<1x1x96xf32> to vector<1x96xf32>
    %199 = vector.broadcast %198 : vector<1x96xf32> to vector<16x96xf32>
    %200 = arith.addf %196, %199 : vector<16x96xf32>
    %c0_119 = arith.constant 0 : index
    %c0_120 = arith.constant 0 : index
    %201 = vector.load %arg26[%c0_119, %c0_120] : memref<16x96xf32, #tpu.memory_space<vmem>>, vector<16x96xf32>
    tpu.vector_store %arg26[%c0_119, %c0_120], %200 {strides = array<i32>} : memref<16x96xf32, #tpu.memory_space<vmem>>, vector<16x96xf32>,
    %c0_121 = arith.constant 0 : index
    %c0_122 = arith.constant 0 : index
    %202 = vector.load %arg26[%c0_121, %c0_122] : memref<16x96xf32, #tpu.memory_space<vmem>>, vector<8x16xf32>
    %c0_123 = arith.constant 0 : index
    %c32_124 = arith.constant 32 : index
    %203 = vector.load %arg26[%c0_123, %c32_124] : memref<16x96xf32, #tpu.memory_space<vmem>>, vector<8x16xf32>
    %c0_125 = arith.constant 0 : index
    %c64_126 = arith.constant 64 : index
    %204 = vector.load %arg26[%c0_125, %c64_126] : memref<16x96xf32, #tpu.memory_space<vmem>>, vector<8x16xf32>
    %205 = tpu.transpose %203, [1, 0] : vector<8x16xf32> -> vector<16x8xf32>
    %cst_127 = arith.constant dense<0.000000e+00> : vector<8x8xf32>
    %206 = tpu.matmul %202, %205, %cst_127 {dimension_numbers = #tpu.dot_dimension_numbers<[1], [0], [0], [1], [0, 0, 1, 1], [], []>} : vector<8x16xf32>, vector<16x8xf32>, vector<8x8xf32> -> vector<8x8xf32>
    %cst_128 = arith.constant dense<0xFF800000> : vector<8xf32>
    %207 = vector.multi_reduction <maximumf>, %206, %cst_128 [1] : vector<8x8xf32> to vector<8xf32>
    %208 = vector.shape_cast %207 : vector<8xf32> to vector<8x1xf32>
    %209 = vector.broadcast %208 : vector<8x1xf32> to vector<8x8xf32>
    %210 = arith.subf %206, %209 : vector<8x8xf32>
    %211 = math.exp %210 : vector<8x8xf32>
    %cst_129 = arith.constant dense<0.000000e+00> : vector<8xf32>
    %212 = vector.multi_reduction <add>, %211, %cst_129 [1] : vector<8x8xf32> to vector<8xf32>
    %213 = vector.shape_cast %212 : vector<8xf32> to vector<8x1xf32>
    %214 = tpu.reciprocal %213 {approx = true} : vector<8x1xf32> -> vector<8x1xf32>
    %215 = vector.broadcast %214 : vector<8x1xf32> to vector<8x8xf32>
    %216 = arith.mulf %211, %215 : vector<8x8xf32>
    %cst_130 = arith.constant dense<0.000000e+00> : vector<8x16xf32>
    %217 = tpu.matmul %216, %204, %cst_130 {dimension_numbers = #tpu.dot_dimension_numbers<[1], [0], [0], [1], [0, 0, 1, 1], [], []>} : vector<8x8xf32>, vector<8x16xf32>, vector<8x16xf32> -> vector<8x16xf32>
    %c0_131 = arith.constant 0 : index
    %c0_132 = arith.constant 0 : index
    %218 = vector.load %arg27[%c0_131, %c0_132] : memref<16x32xf32, #tpu.memory_space<vmem>>, vector<8x16xf32>
    tpu.vector_store %arg27[%c0_131, %c0_132], %217 {strides = array<i32>} : memref<16x32xf32, #tpu.memory_space<vmem>>, vector<8x16xf32>,
    %c0_133 = arith.constant 0 : index
    %c16_134 = arith.constant 16 : index
    %219 = vector.load %arg26[%c0_133, %c16_134] : memref<16x96xf32, #tpu.memory_space<vmem>>, vector<8x16xf32>
    %c0_135 = arith.constant 0 : index
    %c48_136 = arith.constant 48 : index
    %220 = vector.load %arg26[%c0_135, %c48_136] : memref<16x96xf32, #tpu.memory_space<vmem>>, vector<8x16xf32>
    %c0_137 = arith.constant 0 : index
    %c80_138 = arith.constant 80 : index
    %221 = vector.load %arg26[%c0_137, %c80_138] : memref<16x96xf32, #tpu.memory_space<vmem>>, vector<8x16xf32>
    %222 = tpu.transpose %220, [1, 0] : vector<8x16xf32> -> vector<16x8xf32>
    %cst_139 = arith.constant dense<0.000000e+00> : vector<8x8xf32>
    %223 = tpu.matmul %219, %222, %cst_139 {dimension_numbers = #tpu.dot_dimension_numbers<[1], [0], [0], [1], [0, 0, 1, 1], [], []>} : vector<8x16xf32>, vector<16x8xf32>, vector<8x8xf32> -> vector<8x8xf32>
    %cst_140 = arith.constant dense<0xFF800000> : vector<8xf32>
    %224 = vector.multi_reduction <maximumf>, %223, %cst_140 [1] : vector<8x8xf32> to vector<8xf32>
    %225 = vector.shape_cast %224 : vector<8xf32> to vector<8x1xf32>
    %226 = vector.broadcast %225 : vector<8x1xf32> to vector<8x8xf32>
    %227 = arith.subf %223, %226 : vector<8x8xf32>
    %228 = math.exp %227 : vector<8x8xf32>
    %cst_141 = arith.constant dense<0.000000e+00> : vector<8xf32>
    %229 = vector.multi_reduction <add>, %228, %cst_141 [1] : vector<8x8xf32> to vector<8xf32>
    %230 = vector.shape_cast %229 : vector<8xf32> to vector<8x1xf32>
    %231 = tpu.reciprocal %230 {approx = true} : vector<8x1xf32> -> vector<8x1xf32>
    %232 = vector.broadcast %231 : vector<8x1xf32> to vector<8x8xf32>
    %233 = arith.mulf %228, %232 : vector<8x8xf32>
    %cst_142 = arith.constant dense<0.000000e+00> : vector<8x16xf32>
    %234 = tpu.matmul %233, %221, %cst_142 {dimension_numbers = #tpu.dot_dimension_numbers<[1], [0], [0], [1], [0, 0, 1, 1], [], []>} : vector<8x8xf32>, vector<8x16xf32>, vector<8x16xf32> -> vector<8x16xf32>
    %c0_143 = arith.constant 0 : index
    %c16_144 = arith.constant 16 : index
    %235 = vector.load %arg27[%c0_143, %c16_144] : memref<16x32xf32, #tpu.memory_space<vmem>>, vector<8x16xf32>
    tpu.vector_store %arg27[%c0_143, %c16_144], %234 {strides = array<i32>} : memref<16x32xf32, #tpu.memory_space<vmem>>, vector<8x16xf32>,
    %c8_145 = arith.constant 8 : index
    %c0_146 = arith.constant 0 : index
    %236 = vector.load %arg26[%c8_145, %c0_146] : memref<16x96xf32, #tpu.memory_space<vmem>>, vector<8x16xf32>
    %c8_147 = arith.constant 8 : index
    %c32_148 = arith.constant 32 : index
    %237 = vector.load %arg26[%c8_147, %c32_148] : memref<16x96xf32, #tpu.memory_space<vmem>>, vector<8x16xf32>
    %c8_149 = arith.constant 8 : index
    %c64_150 = arith.constant 64 : index
    %238 = vector.load %arg26[%c8_149, %c64_150] : memref<16x96xf32, #tpu.memory_space<vmem>>, vector<8x16xf32>
    %239 = tpu.transpose %237, [1, 0] : vector<8x16xf32> -> vector<16x8xf32>
    %cst_151 = arith.constant dense<0.000000e+00> : vector<8x8xf32>
    %240 = tpu.matmul %236, %239, %cst_151 {dimension_numbers = #tpu.dot_dimension_numbers<[1], [0], [0], [1], [0, 0, 1, 1], [], []>} : vector<8x16xf32>, vector<16x8xf32>, vector<8x8xf32> -> vector<8x8xf32>
    %cst_152 = arith.constant dense<0xFF800000> : vector<8xf32>
    %241 = vector.multi_reduction <maximumf>, %240, %cst_152 [1] : vector<8x8xf32> to vector<8xf32>
    %242 = vector.shape_cast %241 : vector<8xf32> to vector<8x1xf32>
    %243 = vector.broadcast %242 : vector<8x1xf32> to vector<8x8xf32>
    %244 = arith.subf %240, %243 : vector<8x8xf32>
    %245 = math.exp %244 : vector<8x8xf32>
    %cst_153 = arith.constant dense<0.000000e+00> : vector<8xf32>
    %246 = vector.multi_reduction <add>, %245, %cst_153 [1] : vector<8x8xf32> to vector<8xf32>
    %247 = vector.shape_cast %246 : vector<8xf32> to vector<8x1xf32>
    %248 = tpu.reciprocal %247 {approx = true} : vector<8x1xf32> -> vector<8x1xf32>
    %249 = vector.broadcast %248 : vector<8x1xf32> to vector<8x8xf32>
    %250 = arith.mulf %245, %249 : vector<8x8xf32>
    %cst_154 = arith.constant dense<0.000000e+00> : vector<8x16xf32>
    %251 = tpu.matmul %250, %238, %cst_154 {dimension_numbers = #tpu.dot_dimension_numbers<[1], [0], [0], [1], [0, 0, 1, 1], [], []>} : vector<8x8xf32>, vector<8x16xf32>, vector<8x16xf32> -> vector<8x16xf32>
    %c8_155 = arith.constant 8 : index
    %c0_156 = arith.constant 0 : index
    %252 = vector.load %arg27[%c8_155, %c0_156] : memref<16x32xf32, #tpu.memory_space<vmem>>, vector<8x16xf32>
    tpu.vector_store %arg27[%c8_155, %c0_156], %251 {strides = array<i32>} : memref<16x32xf32, #tpu.memory_space<vmem>>, vector<8x16xf32>,
    %c8_157 = arith.constant 8 : index
    %c16_158 = arith.constant 16 : index
    %253 = vector.load %arg26[%c8_157, %c16_158] : memref<16x96xf32, #tpu.memory_space<vmem>>, vector<8x16xf32>
    %c8_159 = arith.constant 8 : index
    %c48_160 = arith.constant 48 : index
    %254 = vector.load %arg26[%c8_159, %c48_160] : memref<16x96xf32, #tpu.memory_space<vmem>>, vector<8x16xf32>
    %c8_161 = arith.constant 8 : index
    %c80_162 = arith.constant 80 : index
    %255 = vector.load %arg26[%c8_161, %c80_162] : memref<16x96xf32, #tpu.memory_space<vmem>>, vector<8x16xf32>
    %256 = tpu.transpose %254, [1, 0] : vector<8x16xf32> -> vector<16x8xf32>
    %cst_163 = arith.constant dense<0.000000e+00> : vector<8x8xf32>
    %257 = tpu.matmul %253, %256, %cst_163 {dimension_numbers = #tpu.dot_dimension_numbers<[1], [0], [0], [1], [0, 0, 1, 1], [], []>} : vector<8x16xf32>, vector<16x8xf32>, vector<8x8xf32> -> vector<8x8xf32>
    %cst_164 = arith.constant dense<0xFF800000> : vector<8xf32>
    %258 = vector.multi_reduction <maximumf>, %257, %cst_164 [1] : vector<8x8xf32> to vector<8xf32>
    %259 = vector.shape_cast %258 : vector<8xf32> to vector<8x1xf32>
    %260 = vector.broadcast %259 : vector<8x1xf32> to vector<8x8xf32>
    %261 = arith.subf %257, %260 : vector<8x8xf32>
    %262 = math.exp %261 : vector<8x8xf32>
    %cst_165 = arith.constant dense<0.000000e+00> : vector<8xf32>
    %263 = vector.multi_reduction <add>, %262, %cst_165 [1] : vector<8x8xf32> to vector<8xf32>
    %264 = vector.shape_cast %263 : vector<8xf32> to vector<8x1xf32>
    %265 = tpu.reciprocal %264 {approx = true} : vector<8x1xf32> -> vector<8x1xf32>
    %266 = vector.broadcast %265 : vector<8x1xf32> to vector<8x8xf32>
    %267 = arith.mulf %262, %266 : vector<8x8xf32>
    %cst_166 = arith.constant dense<0.000000e+00> : vector<8x16xf32>
    %268 = tpu.matmul %267, %255, %cst_166 {dimension_numbers = #tpu.dot_dimension_numbers<[1], [0], [0], [1], [0, 0, 1, 1], [], []>} : vector<8x8xf32>, vector<8x16xf32>, vector<8x16xf32> -> vector<8x16xf32>
    %c8_167 = arith.constant 8 : index
    %c16_168 = arith.constant 16 : index
    %269 = vector.load %arg27[%c8_167, %c16_168] : memref<16x32xf32, #tpu.memory_space<vmem>>, vector<8x16xf32>
    tpu.vector_store %arg27[%c8_167, %c16_168], %268 {strides = array<i32>} : memref<16x32xf32, #tpu.memory_space<vmem>>, vector<8x16xf32>,
    %c0_169 = arith.constant 0 : index
    %c0_170 = arith.constant 0 : index
    %270 = vector.load %arg27[%c0_169, %c0_170] : memref<16x32xf32, #tpu.memory_space<vmem>>, vector<16x32xf32>
    %c1_171 = arith.constant 1 : index
    %c0_172 = arith.constant 0 : index
    %c0_173 = arith.constant 0 : index
    %271 = vector.load %arg7[%c1_171, %c0_172, %c0_173] : memref<2x32x32xbf16, #tpu.memory_space<vmem>>, vector<1x32x32xbf16>
    %272 = vector.shape_cast %271 : vector<1x32x32xbf16> to vector<32x32xbf16>
    %273 = arith.truncf %270 : vector<16x32xf32> to vector<16x32xbf16>
    %cst_174 = arith.constant dense<0.000000e+00> : vector<16x32xf32>
    %274 = tpu.matmul %273, %272, %cst_174 {dimension_numbers = #tpu.dot_dimension_numbers<[1], [0], [0], [1], [0, 0, 1, 1], [], []>} : vector<16x32xbf16>, vector<32x32xbf16>, vector<16x32xf32> -> vector<16x32xf32>
    %c1_175 = arith.constant 1 : index
    %c0_176 = arith.constant 0 : index
    %c0_177 = arith.constant 0 : index
    %275 = vector.load %arg8[%c1_175, %c0_176, %c0_177] : memref<2x1x32xf32, #tpu.memory_space<vmem>>, vector<1x1x32xf32>
    %276 = vector.shape_cast %275 : vector<1x1x32xf32> to vector<1x32xf32>
    %277 = vector.broadcast %276 : vector<1x32xf32> to vector<16x32xf32>
    %278 = arith.addf %274, %277 : vector<16x32xf32>
    %279 = arith.addf %278, %192 : vector<16x32xf32>
    %c1_178 = arith.constant 1 : index
    %c0_179 = arith.constant 0 : index
    %c0_180 = arith.constant 0 : index
    %280 = vector.load %arg9[%c1_178, %c0_179, %c0_180] : memref<2x1x32xf32, #tpu.memory_space<vmem>>, vector<1x1x32xf32>
    %281 = vector.shape_cast %280 : vector<1x1x32xf32> to vector<1x32xf32>
    %c1_181 = arith.constant 1 : index
    %c0_182 = arith.constant 0 : index
    %c0_183 = arith.constant 0 : index
    %282 = vector.load %arg10[%c1_181, %c0_182, %c0_183] : memref<2x1x32xf32, #tpu.memory_space<vmem>>, vector<1x1x32xf32>
    %283 = vector.shape_cast %282 : vector<1x1x32xf32> to vector<1x32xf32>
    %cst_184 = arith.constant dense<0.000000e+00> : vector<16xf32>
    %284 = vector.multi_reduction <add>, %279, %cst_184 [1] : vector<16x32xf32> to vector<16xf32>
    %285 = vector.shape_cast %284 : vector<16xf32> to vector<16x1xf32>
    %cst_185 = arith.constant 3.200000e+01 : f32
    %286 = vector.broadcast %cst_185 : f32 to vector<16x1xf32>
    %287 = arith.divf %285, %286 : vector<16x1xf32>
    %288 = vector.broadcast %287 : vector<16x1xf32> to vector<16x32xf32>
    %289 = arith.subf %279, %288 : vector<16x32xf32>
    %290 = arith.mulf %289, %289 : vector<16x32xf32>
    %cst_186 = arith.constant dense<0.000000e+00> : vector<16xf32>
    %291 = vector.multi_reduction <add>, %290, %cst_186 [1] : vector<16x32xf32> to vector<16xf32>
    %292 = vector.shape_cast %291 : vector<16xf32> to vector<16x1xf32>
    %cst_187 = arith.constant 3.200000e+01 : f32
    %293 = vector.broadcast %cst_187 : f32 to vector<16x1xf32>
    %294 = arith.divf %292, %293 : vector<16x1xf32>
    %cst_188 = arith.constant 9.99999996E-13 : f32
    %295 = vector.broadcast %cst_188 : f32 to vector<16x1xf32>
    %296 = arith.addf %294, %295 : vector<16x1xf32>
    %297 = math.rsqrt %296 : vector<16x1xf32>
    %298 = vector.broadcast %297 : vector<16x1xf32> to vector<16x32xf32>
    %299 = arith.mulf %289, %298 : vector<16x32xf32>
    %300 = vector.broadcast %281 : vector<1x32xf32> to vector<16x32xf32>
    %301 = arith.mulf %299, %300 : vector<16x32xf32>
    %302 = vector.broadcast %283 : vector<1x32xf32> to vector<16x32xf32>
    %303 = arith.addf %301, %302 : vector<16x32xf32>
    %c1_189 = arith.constant 1 : index
    %c0_190 = arith.constant 0 : index
    %c0_191 = arith.constant 0 : index
    %304 = vector.load %arg11[%c1_189, %c0_190, %c0_191] : memref<2x32x64xbf16, #tpu.memory_space<vmem>>, vector<1x32x64xbf16>
    %305 = vector.shape_cast %304 : vector<1x32x64xbf16> to vector<32x64xbf16>
    %306 = arith.truncf %303 : vector<16x32xf32> to vector<16x32xbf16>
    %cst_192 = arith.constant dense<0.000000e+00> : vector<16x64xf32>
    %307 = tpu.matmul %306, %305, %cst_192 {dimension_numbers = #tpu.dot_dimension_numbers<[1], [0], [0], [1], [0, 0, 1, 1], [], []>} : vector<16x32xbf16>, vector<32x64xbf16>, vector<16x64xf32> -> vector<16x64xf32>
    %c1_193 = arith.constant 1 : index
    %c0_194 = arith.constant 0 : index
    %c0_195 = arith.constant 0 : index
    %308 = vector.load %arg12[%c1_193, %c0_194, %c0_195] : memref<2x1x64xf32, #tpu.memory_space<vmem>>, vector<1x1x64xf32>
    %309 = vector.shape_cast %308 : vector<1x1x64xf32> to vector<1x64xf32>
    %310 = vector.broadcast %309 : vector<1x64xf32> to vector<16x64xf32>
    %311 = arith.addf %307, %310 : vector<16x64xf32>
    %cst_196 = arith.constant 5.000000e-01 : f32
    %312 = vector.broadcast %cst_196 : f32 to vector<16x64xf32>
    %313 = arith.mulf %312, %311 : vector<16x64xf32>
    %cst_197 = arith.constant 4.471500e-02 : f32
    %314 = vector.broadcast %cst_197 : f32 to vector<16x64xf32>
    %315 = arith.mulf %314, %311 : vector<16x64xf32>
    %316 = arith.mulf %315, %311 : vector<16x64xf32>
    %317 = arith.mulf %316, %311 : vector<16x64xf32>
    %318 = arith.addf %311, %317 : vector<16x64xf32>
    %cst_198 = arith.constant 0.797884583 : f32
    %319 = vector.broadcast %cst_198 : f32 to vector<16x64xf32>
    %320 = arith.mulf %319, %318 : vector<16x64xf32>
    %321 = math.tanh %320 : vector<16x64xf32>
    %cst_199 = arith.constant 1.000000e+00 : f32
    %322 = vector.broadcast %cst_199 : f32 to vector<16x64xf32>
    %323 = arith.addf %322, %321 : vector<16x64xf32>
    %324 = arith.mulf %313, %323 : vector<16x64xf32>
    %c1_200 = arith.constant 1 : index
    %c0_201 = arith.constant 0 : index
    %c0_202 = arith.constant 0 : index
    %325 = vector.load %arg13[%c1_200, %c0_201, %c0_202] : memref<2x64x32xbf16, #tpu.memory_space<vmem>>, vector<1x64x32xbf16>
    %326 = vector.shape_cast %325 : vector<1x64x32xbf16> to vector<64x32xbf16>
    %327 = arith.truncf %324 : vector<16x64xf32> to vector<16x64xbf16>
    %cst_203 = arith.constant dense<0.000000e+00> : vector<16x32xf32>
    %328 = tpu.matmul %327, %326, %cst_203 {dimension_numbers = #tpu.dot_dimension_numbers<[1], [0], [0], [1], [0, 0, 1, 1], [], []>} : vector<16x64xbf16>, vector<64x32xbf16>, vector<16x32xf32> -> vector<16x32xf32>
    %c1_204 = arith.constant 1 : index
    %c0_205 = arith.constant 0 : index
    %c0_206 = arith.constant 0 : index
    %329 = vector.load %arg14[%c1_204, %c0_205, %c0_206] : memref<2x1x32xf32, #tpu.memory_space<vmem>>, vector<1x1x32xf32>
    %330 = vector.shape_cast %329 : vector<1x1x32xf32> to vector<1x32xf32>
    %331 = vector.broadcast %330 : vector<1x32xf32> to vector<16x32xf32>
    %332 = arith.addf %328, %331 : vector<16x32xf32>
    %333 = arith.addf %332, %303 : vector<16x32xf32>
    %c1_207 = arith.constant 1 : index
    %c0_208 = arith.constant 0 : index
    %c0_209 = arith.constant 0 : index
    %334 = vector.load %arg15[%c1_207, %c0_208, %c0_209] : memref<2x1x32xf32, #tpu.memory_space<vmem>>, vector<1x1x32xf32>
    %335 = vector.shape_cast %334 : vector<1x1x32xf32> to vector<1x32xf32>
    %c1_210 = arith.constant 1 : index
    %c0_211 = arith.constant 0 : index
    %c0_212 = arith.constant 0 : index
    %336 = vector.load %arg16[%c1_210, %c0_211, %c0_212] : memref<2x1x32xf32, #tpu.memory_space<vmem>>, vector<1x1x32xf32>
    %337 = vector.shape_cast %336 : vector<1x1x32xf32> to vector<1x32xf32>
    %cst_213 = arith.constant dense<0.000000e+00> : vector<16xf32>
    %338 = vector.multi_reduction <add>, %333, %cst_213 [1] : vector<16x32xf32> to vector<16xf32>
    %339 = vector.shape_cast %338 : vector<16xf32> to vector<16x1xf32>
    %cst_214 = arith.constant 3.200000e+01 : f32
    %340 = vector.broadcast %cst_214 : f32 to vector<16x1xf32>
    %341 = arith.divf %339, %340 : vector<16x1xf32>
    %342 = vector.broadcast %341 : vector<16x1xf32> to vector<16x32xf32>
    %343 = arith.subf %333, %342 : vector<16x32xf32>
    %344 = arith.mulf %343, %343 : vector<16x32xf32>
    %cst_215 = arith.constant dense<0.000000e+00> : vector<16xf32>
    %345 = vector.multi_reduction <add>, %344, %cst_215 [1] : vector<16x32xf32> to vector<16xf32>
    %346 = vector.shape_cast %345 : vector<16xf32> to vector<16x1xf32>
    %cst_216 = arith.constant 3.200000e+01 : f32
    %347 = vector.broadcast %cst_216 : f32 to vector<16x1xf32>
    %348 = arith.divf %346, %347 : vector<16x1xf32>
    %cst_217 = arith.constant 9.99999996E-13 : f32
    %349 = vector.broadcast %cst_217 : f32 to vector<16x1xf32>
    %350 = arith.addf %348, %349 : vector<16x1xf32>
    %351 = math.rsqrt %350 : vector<16x1xf32>
    %352 = vector.broadcast %351 : vector<16x1xf32> to vector<16x32xf32>
    %353 = arith.mulf %343, %352 : vector<16x32xf32>
    %354 = vector.broadcast %335 : vector<1x32xf32> to vector<16x32xf32>
    %355 = arith.mulf %353, %354 : vector<16x32xf32>
    %356 = vector.broadcast %337 : vector<1x32xf32> to vector<16x32xf32>
    %357 = arith.addf %355, %356 : vector<16x32xf32>
    %358 = vector.extract_strided_slice %357 {offsets = [0, 0], sizes = [1, 32], strides = [1, 1]} : vector<16x32xf32> to vector<1x32xf32>
    %359 = vector.extract_strided_slice %357 {offsets = [8, 0], sizes = [1, 32], strides = [1, 1]} : vector<16x32xf32> to vector<1x32xf32>
    %360 = tpu.concatenate %358, %359 in 0 : vector<1x32xf32>, vector<1x32xf32> -> vector<2x32xf32>
    %c0_218 = arith.constant 0 : index
    %c0_219 = arith.constant 0 : index
    %361 = vector.load %arg17[%c0_218, %c0_219] : memref<32x32xbf16, #tpu.memory_space<vmem>>, vector<32x32xbf16>
    %362 = arith.truncf %360 : vector<2x32xf32> to vector<2x32xbf16>
    %cst_220 = arith.constant dense<0.000000e+00> : vector<2x32xf32>
    %363 = tpu.matmul %362, %361, %cst_220 {dimension_numbers = #tpu.dot_dimension_numbers<[1], [0], [0], [1], [0, 0, 1, 1], [], []>} : vector<2x32xbf16>, vector<32x32xbf16>, vector<2x32xf32> -> vector<2x32xf32>
    %c0_221 = arith.constant 0 : index
    %c0_222 = arith.constant 0 : index
    %364 = vector.load %arg18[%c0_221, %c0_222] : memref<1x32xf32, #tpu.memory_space<vmem>>, vector<1x32xf32>
    %365 = vector.broadcast %364 : vector<1x32xf32> to vector<2x32xf32>
    %366 = arith.addf %363, %365 : vector<2x32xf32>
    %367 = math.tanh %366 : vector<2x32xf32>
    %c0_223 = arith.constant 0 : index
    %c0_224 = arith.constant 0 : index
    %368 = vector.load %arg19[%c0_223, %c0_224] : memref<32x32xbf16, #tpu.memory_space<vmem>>, vector<32x32xbf16>
    %c0_225 = arith.constant 0 : index
    %c0_226 = arith.constant 0 : index
    %369 = vector.load %arg20[%c0_225, %c0_226] : memref<1x32xf32, #tpu.memory_space<vmem>>, vector<1x32xf32>
    %370 = arith.truncf %367 : vector<2x32xf32> to vector<2x32xbf16>
    %cst_227 = arith.constant dense<0.000000e+00> : vector<2x32xf32>
    %371 = tpu.matmul %370, %368, %cst_227 {dimension_numbers = #tpu.dot_dimension_numbers<[1], [0], [0], [1], [0, 0, 1, 1], [], []>} : vector<2x32xbf16>, vector<32x32xbf16>, vector<2x32xf32> -> vector<2x32xf32>
    %372 = vector.broadcast %369 : vector<1x32xf32> to vector<2x32xf32>
    %373 = arith.addf %371, %372 : vector<2x32xf32>
    %cst_228 = arith.constant 0.000000e+00 : f32
    %374 = vector.broadcast %cst_228 : f32 to vector<2x32xf32>
    %375 = arith.maximumf %373, %374 : vector<2x32xf32>
    %c0_229 = arith.constant 0 : index
    %c0_230 = arith.constant 0 : index
    %376 = vector.load %arg21[%c0_229, %c0_230] : memref<32x32xbf16, #tpu.memory_space<vmem>>, vector<32x32xbf16>
    %c0_231 = arith.constant 0 : index
    %c0_232 = arith.constant 0 : index
    %377 = vector.load %arg22[%c0_231, %c0_232] : memref<1x32xf32, #tpu.memory_space<vmem>>, vector<1x32xf32>
    %378 = arith.truncf %375 : vector<2x32xf32> to vector<2x32xbf16>
    %cst_233 = arith.constant dense<0.000000e+00> : vector<2x32xf32>
    %379 = tpu.matmul %378, %376, %cst_233 {dimension_numbers = #tpu.dot_dimension_numbers<[1], [0], [0], [1], [0, 0, 1, 1], [], []>} : vector<2x32xbf16>, vector<32x32xbf16>, vector<2x32xf32> -> vector<2x32xf32>
    %380 = vector.broadcast %377 : vector<1x32xf32> to vector<2x32xf32>
    %381 = arith.addf %379, %380 : vector<2x32xf32>
    %cst_234 = arith.constant 0.000000e+00 : f32
    %382 = vector.broadcast %cst_234 : f32 to vector<2x32xf32>
    %383 = arith.maximumf %381, %382 : vector<2x32xf32>
    %c0_235 = arith.constant 0 : index
    %c0_236 = arith.constant 0 : index
    %384 = vector.load %arg23[%c0_235, %c0_236] : memref<32x6xbf16, #tpu.memory_space<vmem>>, vector<32x6xbf16>
    %385 = arith.truncf %383 : vector<2x32xf32> to vector<2x32xbf16>
    %cst_237 = arith.constant dense<0.000000e+00> : vector<2x6xf32>
    %386 = tpu.matmul %385, %384, %cst_237 {dimension_numbers = #tpu.dot_dimension_numbers<[1], [0], [0], [1], [0, 0, 1, 1], [], []>} : vector<2x32xbf16>, vector<32x6xbf16>, vector<2x6xf32> -> vector<2x6xf32>
    %c0_238 = arith.constant 0 : index
    %c0_239 = arith.constant 0 : index
    %387 = vector.load %arg24[%c0_238, %c0_239] : memref<1x6xf32, #tpu.memory_space<vmem>>, vector<1x6xf32>
    %388 = vector.broadcast %387 : vector<1x6xf32> to vector<2x6xf32>
    %389 = arith.addf %386, %388 : vector<2x6xf32>
    %c0_240 = arith.constant 0 : index
    %c0_241 = arith.constant 0 : index
    %390 = vector.load %arg25[%c0_240, %c0_241] : memref<2x6xf32, #tpu.memory_space<vmem>>, vector<2x6xf32>
    tpu.vector_store %arg25[%c0_240, %c0_241], %389 {strides = array<i32>} : memref<2x6xf32, #tpu.memory_space<vmem>>, vector<2x6xf32>,
    return
  }
}

</mosaic_0001>

<bundles_post_ra>
// kernel: bert_erc_forward.1
= control target key start
LH: loop header
LB: loop body
LE: loop exit
PB: predicated region body
PF: predicated region fallthrough
CT: control target
= control target key end

     0   :  { %s3667_s0 = inlined_call_operand.vmem [shape: f32[16,32], index: 0, kind: input, shape index: {}]   ;;  %s3668_s1 = inlined_call_operand.vmem [shape: f32[16,32], index: 1, kind: input, shape index: {}]   ;;  %s3669_s2 = inlined_call_operand.vmem [shape: f32[8,32], index: 2, kind: input, shape index: {}]   ;;  %s3670_s3 = inlined_call_operand.vmem [shape: f32[1,32], index: 3, kind: input, shape index: {}]   ;;  %s3671_s4 = inlined_call_operand.vmem [shape: f32[1,32], index: 4, kind: input, shape index: {}]   ;;  %s3672_s5 = inlined_call_operand.vmem [shape: bf16[2,32,96], index: 5, kind: input, shape index: {}]   ;;  %s3673_s6 = inlined_call_operand.vmem [shape: f32[2,1,96], index: 6, kind: input, shape index: {}]   ;;  %s3674_s7 = inlined_call_operand.vmem [shape: bf16[2,32,32], index: 7, kind: input, shape index: {}]   ;;  %s3675_s8 = inlined_call_operand.vmem [shape: f32[2,1,32], index: 8, kind: input, shape index: {}]   ;;  %s3676_s9 = inlined_call_operand.vmem [shape: f32[2,1,32], index: 9, kind: input, shape index: {}]   ;;  %s3677_s10 = inlined_call_operand.vmem [shape: f32[2,1,32], index: 10, kind: input, shape index: {}]   ;;  %s3678_s11 = inlined_call_operand.vmem [shape: bf16[2,32,64], index: 11, kind: input, shape index: {}]   ;;  %s3679_s12 = inlined_call_operand.vmem [shape: f32[2,1,64], index: 12, kind: input, shape index: {}]   ;;  %s3680_s13 = inlined_call_operand.vmem [shape: bf16[2,64,32], index: 13, kind: input, shape index: {}]   ;;  %s3681_s14 = inlined_call_operand.vmem [shape: f32[2,1,32], index: 14, kind: input, shape index: {}]   ;;  %s3682_s15 = inlined_call_operand.vmem [shape: f32[2,1,32], index: 15, kind: input, shape index: {}]   ;;  %s3683_s16 = inlined_call_operand.vmem [shape: f32[2,1,32], index: 16, kind: input, shape index: {}]   ;;  %s3684_s17 = inlined_call_operand.vmem [shape: bf16[32,32], index: 17, kind: input, shape index: {}]   ;;  %s3685_s18 = inlined_call_operand.vmem [shape: f32[1,32], index: 18, kind: input, shape index: {}]   ;;  %s3686_s19 = inlined_call_operand.vmem [shape: bf16[32,32], index: 19, kind: input, shape index: {}]   ;;  %s3687_s20 = inlined_call_operand.vmem [shape: f32[1,32], index: 20, kind: input, shape index: {}]   ;;  %s3688_s21 = inlined_call_operand.vmem [shape: bf16[32,32], index: 21, kind: input, shape index: {}]   ;;  %s3689_s22 = inlined_call_operand.vmem [shape: f32[1,32], index: 22, kind: input, shape index: {}]   ;;  %s3690_s23 = inlined_call_operand.vmem [shape: bf16[32,6], index: 23, kind: input, shape index: {}]   ;;  %s3691_s24 = inlined_call_operand.vmem [shape: f32[1,6], index: 24, kind: input, shape index: {}]   ;;  %s3692_s25 = inlined_call_operand.hbm [shape: f32[2,6], index: 25, kind: output, shape index: {}]  }
   0x1   :  { %3706 = sst [smem:[#allocation7_spill]] %s3667_s0 }
   0x2   :  { %3707 = sst [smem:[#allocation8_spill]] %s3668_s1 }
   0x3   :  { %3708 = sst [smem:[#allocation9_spill]] %s3669_s2 }
   0x4   :  { %3709 = sst [smem:[#allocation10_spill]] %s3670_s3 }
   0x5   :  { %3710 = sst [smem:[#allocation11_spill]] %s3671_s4 }
   0x6   :  { %3711 = sst [smem:[#allocation12_spill]] %s3672_s5 }
   0x7   :  { %3712 = sst [smem:[#allocation13_spill]] %s3673_s6 }
   0x8   :  { %3713 = sst [smem:[#allocation14_spill]] %s3674_s7 }
   0x9   :  { %3714 = sst [smem:[#allocation15_spill]] %s3675_s8 }
   0xa   :  { %3715 = sst [smem:[#allocation16_spill]] %s3676_s9 }
   0xb   :  { %3716 = sst [smem:[#allocation17_spill]] %s3687_s20 }
   0xc   :  { %s3717_s6 = sld [smem:[#allocation9_spill]]  ;;  %s3718_s20 = sld [smem:[#allocation7_spill]]  ;;  %vm93_vm0 = vcmask 261120  }
   0xd   :  { %s3719_s1 = sld [smem:[#allocation8_spill]] }
  0x12   :  { %v82_v0 = vld [vmem:[%s3717_s6] sm:$0xff]  ;;  %v84_v4 = vld [vmem:[%s3718_s20 + $0x8] sm:$0xff] }
  0x13   :  { %v83_v1 = vld [vmem:[%s3718_s20] sm:$0xff]  ;;  %v86_v5 = vld [vmem:[%s3719_s1 + $0x8] sm:$0xff] }
  0x14   :  { %v85_v2 = vld [vmem:[%s3719_s1] sm:$0xff]  ;;  %v88_v6 = vadd.f32 %v86_v5, %v84_v4 }
  0x15   :  { %v87_v3 = vadd.f32 %v85_v2, %v83_v1 }
  0x16   :  { %v90_v8 = vadd.f32 %v88_v6, %v82_v0 }
  0x17   :  { %v89_v7 = vadd.f32 %v87_v3, %v82_v0 }
  0x18   :  { %v97_v10 = vsel %vm93_vm0, %v90_v8, 0.0 }
  0x19   :  { %v94_v9 = vsel %vm93_vm0, %v89_v7, 0.0 }
  0x1a   :  { %95 = vadd.xlane.f32.xlu0 %v94_v9 }
  0x1e   :  { %98 = vadd.xlane.f32.xlu0 %v97_v10 }
  0x1f   :  { %30 = vsyncpa [#allocation5], 0  ;;  %s3720_s5 = sld [smem:[#allocation12_spill]]  ;;  %v3095_v22 = vmov 0.0   ;;  %vm3096_vm1 = vmmov 0   ;;  %s3721_s30 = sld [smem:[#allocation10_spill]] }
  0x20   :  { %2788 = vmatprep.subr.bf16.mxu0 %v3095_v22  ;;  %2796 = vmatprep.subr.mxu1 %v3095_v22  ;;  %s3722_s26 = sld [smem:[#allocation11_spill]]  ;;  %s3723_s27 = sld [smem:[#allocation13_spill]]  ;;  %vm205_vm2 = vcmask 785408   ;;  %vm212_vm3 = vcmask 130048   ;;  %vm287_vm4 = vcmask 64512   ;;  %vm547_vm5 = vcmask 261248  }
  0x21   :  { %2792 = vmatprep.mubr.msk.bf16.mxu0 %vm3096_vm1, %v3095_v22  ;;  %2798 = vmatprep.mubr.msk.f32.mxu1 %vm3096_vm1, %v3095_v22  ;;  %s3097_s4 = smov 96   ;;  %s3098_s28 = smov 80   ;;  %vm1129_vm6 = vcmask 523264   ;;  %vm2313_vm7 = vcmask 1040384   ;;  %vm2586_vm8 = vcmask 41984  }
  0x22   :  { %s3099_s20 = smov 112   ;;  %s3702_s9 = smov 64  }
  0x23   :  { %s3704_s0 = smov 48   ;;  %s3724_s6 = sld [smem:[#allocation14_spill]] }
  0x24   :  { %s3700_s3 = smov 16   ;;  %s3725_s8 = sld [smem:[#allocation15_spill]] }
  0x25   :  { %v2981_v21 = vld [vmem:[%s3720_s5] sm:$0xff]   ;;  %v2982_v23 = vld [vmem:[%s3720_s5 + $0x8] sm:$0xff]   ;;  %s3726_s29 = sld [smem:[#allocation16_spill]]  ;;  %s3730_s2 = sld [smem:[#allocation17_spill]] }
  0x26   :  { %2789 = vmatpush3.bf16.msra.mxu0 %v2981_v21  ;;  %v2602_v32 = vld [vmem:[%s3721_s30] ss:$0 sm:$0xff]  ;;  %s3103_s7 = smov [#allocation4]  }
  0x27   :  { %2790 = vmatprep.subr.bf16.mxu0 %v3095_v22  ;;  %v2603_v36 = vld [vmem:[%s3722_s26] ss:$0 sm:$0xff] }
  0x28   :  { %v2604_v41 = vld [vmem:[%s3723_s27] ss:$0 sm:$0xff] }
  0x2a   :  { %2791 = vmatpush3.bf16.msra.mxu0 %v2982_v23 }
  0x2b   :  { %2811 = vmatprep.subr.mxu0 %v3095_v22 }
  0xa7   :  { %v96_v11 = vpop.xlane.xlu0 %95 }
  0xa8   :  { %v101_v12 = vmul.f32 0.03125, %v96_v11 }
  0xaa   :  { %v103_v13 = vsub.f32 %v89_v7, %v101_v12 }
  0xab   :  { %v99_v14 = vpop.xlane.xlu0 %98 }
  0xac   :  { %v102_v15 = vmul.f32 0.03125, %v99_v14  ;;  %v105_v16 = vmul.f32 %v103_v13, %v103_v13 }
  0xae   :  { %v104_v17 = vsub.f32 %v90_v8, %v102_v15  ;;  %v107_v18 = vsel %vm93_vm0, %v105_v16, 0.0 }
  0xaf   :  { %108 = vadd.xlane.f32.xlu1 %v107_v18 }
  0xb0   :  { %v106_v19 = vmul.f32 %v104_v17, %v104_v17 }
  0xb2   :  { %v110_v20 = vsel %vm93_vm0, %v106_v19, 0.0 }
  0xb3   :  { %111 = vadd.xlane.f32.xlu1 %v110_v20 }
 0x13c   :  { %v109_v24 = vpop.xlane.xlu1 %108 }
 0x13d   :  { %v113_v25 = vmul.f32 0.03125, %v109_v24 }
 0x13f   :  { %v115_v26 = vadd.f32 1e-12, %v113_v25 }
 0x140   :  { %v112_v27 = vpop.xlane.xlu1 %111 }
 0x141   :  { %3009 = vrsqrt.f32 %v115_v26  ;;  %v114_v28 = vmul.f32 0.03125, %v112_v27 }
 0x143   :  { %v116_v29 = vadd.f32 1e-12, %v114_v28 }
 0x145   :  { %3011 = vrsqrt.f32 %v116_v29 }
 0x14b   :  { %v3010_v30 = vpop.eup %3009 }
 0x14c   :  { %v119_v31 = vmul.f32 %v3010_v30, %v103_v13 }
 0x14e   :  { %v127_v35 = vmul.f32 %v2602_v32, %v119_v31 }
 0x14f   :  { %v3012_v33 = vpop.eup %3011 }
 0x150   :  { %v120_v34 = vmul.f32 %v3012_v33, %v104_v17  ;;  %v3273_v38 = vadd.f32 %v2603_v36, %v127_v35 }
 0x152   :  { %v128_v37 = vmul.f32 %v2602_v32, %v120_v34 }
 0x154   :  { %v3275_v39 = vadd.f32 %v2603_v36, %v128_v37 }
 0x156   :  { %v141_v40 = vpack.c.bf16 %v3275_v39, %v3273_v38 }
 0x158   :  { %2793 = vmatmul.mubr.msk.bf16.vlgmr.msra.gmra.mrb[0].mxu0 %vm93_vm0, %v141_v40 }
 0x159   :  { %2813 = vmatprep.mubr.msk.f32.mxu0 %vm3096_vm1, %v3095_v22 }
 0x22b   :  { %v198_v42 = vpop.f32.mrb[0].mxu0 }
 0x22c   :  { %v199_v43 = vadd.f32 %v2604_v41, %v198_v42  ;;  %v2794_v44 = vpop.f32.mrb[1].mxu0 }
 0x22d   :  { %v201_v45 = vpop.f32.mrb[2].mxu0 }
 0x22e   :  { %206 = vst.msk [vmem:[#allocation2] sm:$0xff] %vm205_vm2, %v199_v43  ;;  %v202_v46 = vadd.f32 %v2604_v41, %v201_v45  ;;  %v2795_v47 = vpop.f32.mrb[3].mxu0  ;;  %v2983_v45 = vld [vmem:[%s3724_s6] sm:$0xff]  }
 0x230   :  { %207 = vst.msk [vmem:[#allocation2 + $0x8] sm:$0xff] %vm205_vm2, %v202_v46  ;;  %v2984_v46 = vld [vmem:[%s3724_s6 + $0x8] sm:$0xff]  }
 0x235   :  { %v3287_v48 = vld [vmem:[#allocation2] sm:$0xff] }
 0x236   :  { %210 = vrot.lane.b32.xlu0 %v3287_v48, %s3097_s4 }
 0x237   :  { %v3293_v49 = vld [vmem:[#allocation2 + $0x8] sm:$0xff] }
 0x23a   :  { %380 = vrot.lane.b32.xlu0 %v3287_v48, %s3098_s28 }
 0x23e   :  { %551 = vrot.lane.b32.xlu0 %v3293_v49, %s3097_s4 }
 0x242   :  { %717 = vrot.lane.b32.xlu0 %v3293_v49, %s3099_s20 }
 0x2a8   :  { %v211_v50 = vpop.permute.xlu0 %210 }
 0x2a9   :  { %2797 = vmatpush3.xpose.msk.msra.mxu1 %vm212_vm3, %v211_v50 }
 0x2aa   :  { %2801 = vmatprep.subr.mxu1 %v3095_v22 }
 0x2ac   :  { %2799 = vmatmul.mubr.msk.f32.vlgmr.msra.gmra.mrb[0].mxu1 %vm212_vm3, %v3287_v48  ;;  %v381_v63 = vpop.permute.xlu0 %380 }
 0x2ad   :  { %2803 = vmatprep.mubr.msk.f32.mxu1 %vm3096_vm1, %v3095_v22 }
 0x2b0   :  { %v552_v1 = vpop.permute.xlu0 %551 }
 0x2b4   :  { %v718_v3 = vpop.permute.xlu0 %717 }
 0x37f   :  { %v283_v51 = vpop.f32.mrb[0].mxu1 }
 0x380   :  { %v2800_v52 = vpop.f32.mrb[1].mxu1  ;;  %v288_v53 = vsel %vm287_vm4, %v283_v51, -inf }
 0x381   :  { %289 = vmax.xlane.f32.xlu1 %v288_v53 }
 0x392   :  { %299 = vrot.lane.b32.xlu1 %v3287_v48, %s3702_s9 }
 0x396   :  { %378 = vrot.lane.b32.xlu1 %v3287_v48, %s3099_s20 }
 0x40e   :  { %v290_v54 = vpop.xlane.xlu1 %289 }
 0x40f   :  { %v291_v55 = vsub.f32 %v283_v51, %v290_v54 }
 0x411   :  { %v292_v56 = vmul.f32 1.442695, %v291_v55 }
 0x412   :  { %v300_v57 = vpop.permute.xlu1 %299 }
 0x413   :  { %3013 = vpow2.f32 %v292_v56  ;;  %2802 = vmatpush3.msra.mxu1 %v300_v57 }
 0x414   :  { %2806 = vmatprep.subr.mxu1 %v3095_v22 }
 0x416   :  { %v379_v60 = vpop.permute.xlu1 %378 }
 0x41d   :  { %v3014_v58 = vpop.eup %3013 }
 0x41e   :  { %v294_v59 = vsel %vm287_vm4, %v3014_v58, 0.0 }
 0x41f   :  { %295 = vadd.xlane.f32.xlu1 %v294_v59 }
 0x430   :  { %719 = vrot.lane.b32.xlu1 %v3293_v49, %s3098_s28 }
 0x4ac   :  { %v296_v61 = vpop.xlane.xlu1 %295 }
 0x4ad   :  { %3015 = vrcp.f32 %v296_v61 }
 0x4b0   :  { %v720_v2 = vpop.permute.xlu1 %719 }
 0x4b7   :  { %v3016_v62 = vpop.eup %3015 }
 0x4b8   :  { %v298_v0 = vmul.f32 %v3016_v62, %v3014_v58  ;;  %v2620_v58 = vld [vmem:[%s3725_s8] ss:$0 sm:$0xff] }
 0x4ba   :  { %2804 = vmatmul.mubr.msk.f32.vlgmr.msra.gmra.mrb[2].mxu1 %vm287_vm4, %v298_v0 }
 0x4bb   :  { %2807 = vmatpush3.xpose.msk.msra.mxu1 %vm212_vm3, %v381_v63  ;;  %2808 = vmatprep.mubr.msk.f32.mxu1 %vm3096_vm1, %v3095_v22 }
 0x4bc   :  { %2816 = vmatprep.subr.mxu1 %v3095_v22 }
 0x4be   :  { %2809 = vmatmul.mubr.msk.f32.vlgmr.msra.gmra.mrb[4].mxu1 %vm212_vm3, %v379_v60 }
 0x4bf   :  { %2817 = vmatpush3.xpose.msk.msra.mxu1 %vm212_vm3, %v552_v1  ;;  %2818 = vmatprep.mubr.msk.f32.mxu1 %vm3096_vm1, %v3095_v22 }
 0x4c0   :  { %2826 = vmatprep.subr.mxu1 %v3095_v22 }
 0x4c2   :  { %2819 = vmatmul.mubr.msk.f32.vlgmr.msra.gmra.mrb[6].mxu1 %vm212_vm3, %v3293_v49 }
 0x4c3   :  { %2827 = vmatpush3.xpose.msk.msra.mxu1 %vm212_vm3, %v720_v2  ;;  %2828 = vmatprep.mubr.msk.f32.mxu1 %vm3096_vm1, %v3095_v22 }
 0x4c4   :  { %2836 = vmatprep.subr.bf16.mxu1 %v3095_v22 }
 0x4c6   :  { %2829 = vmatmul.mubr.msk.f32.vlgmr.msra.gmra.mrb[8].mxu1 %vm212_vm3, %v718_v3 }
 0x4c7   :  { %2840 = vmatprep.mubr.msk.bf16.mxu1 %vm3096_vm1, %v3095_v22  ;;  %2837 = vmatpush3.bf16.msra.mxu1 %v2983_v45 }
 0x4c8   :  { %2838 = vmatprep.subr.bf16.mxu1 %v3095_v22 }
 0x4cb   :  { %2839 = vmatpush3.bf16.msra.mxu1 %v2984_v46 }
 0x4cc   :  { %2852 = vmatprep.subr.bf16.mxu1 %v3095_v22 }
 0x58d   :  { %v371_v4 = vpop.f32.mrb[2].mxu1 }
 0x58e   :  { %375 = vst.msk [vmem:[#allocation3] sm:$0xff] %vm212_vm3, %v371_v4  ;;  %v2805_v5 = vpop.f32.mrb[3].mxu1 }
 0x591   :  { %v452_v6 = vpop.f32.mrb[4].mxu1 }
 0x592   :  { %v2810_v7 = vpop.f32.mrb[5].mxu1  ;;  %v456_v8 = vsel %vm287_vm4, %v452_v6, -inf }
 0x593   :  { %457 = vmax.xlane.f32.xlu1 %v456_v8 }
 0x595   :  { %v623_v9 = vpop.f32.mrb[6].mxu1 }
 0x596   :  { %v2820_v10 = vpop.f32.mrb[7].mxu1  ;;  %v627_v11 = vsel %vm287_vm4, %v623_v9, -inf }
 0x597   :  { %628 = vmax.xlane.f32.xlu0 %v627_v11 }
 0x599   :  { %v791_v12 = vpop.f32.mrb[8].mxu1 }
 0x59a   :  { %v2830_v13 = vpop.f32.mrb[9].mxu1  ;;  %v795_v14 = vsel %vm287_vm4, %v791_v12, -inf }
 0x59b   :  { %796 = vmax.xlane.f32.xlu0 %v795_v14  ;;  %v2986_v14 = vld [vmem:[%s3678_s11 + $0x8] sm:$0xff]  }
 0x5a4   :  { %467 = vrot.lane.b32.xlu1 %v3287_v48, %s3704_s0 }
 0x620   :  { %v458_v15 = vpop.xlane.xlu1 %457 }
 0x621   :  { %v459_v16 = vsub.f32 %v452_v6, %v458_v15 }
 0x623   :  { %v460_v17 = vmul.f32 1.442695, %v459_v16 }
 0x624   :  { %v468_v18 = vpop.permute.xlu1 %467  ;;  %v629_v19 = vpop.xlane.xlu0 %628 }
 0x625   :  { %3017 = vpow2.f32 %v460_v17  ;;  %v630_v20 = vsub.f32 %v623_v9, %v629_v19  ;;  %2812 = vmatpush3.msra.mxu0 %v468_v18 }
 0x626   :  { %2821 = vmatprep.subr.mxu0 %v3095_v22 }
 0x627   :  { %v631_v21 = vmul.f32 1.442695, %v630_v20 }
 0x628   :  { %v797_v23 = vpop.xlane.xlu0 %796 }
 0x629   :  { %3019 = vpow2.f32 %v631_v21  ;;  %v798_v24 = vsub.f32 %v791_v12, %v797_v23 }
 0x62b   :  { %v799_v25 = vmul.f32 1.442695, %v798_v24  ;;  %v2624_v24 = vld [vmem:[%s3726_s29] ss:$0 sm:$0xff] }
 0x62d   :  { %3021 = vpow2.f32 %v799_v25 }
 0x62f   :  { %v3018_v26 = vpop.eup %3017 }
 0x630   :  { %v462_v27 = vsel %vm287_vm4, %v3018_v26, 0.0 }
 0x631   :  { %463 = vadd.xlane.f32.xlu0 %v462_v27 }
 0x633   :  { %v3020_v28 = vpop.eup %3019 }
 0x634   :  { %v633_v29 = vsel %vm287_vm4, %v3020_v28, 0.0 }
 0x635   :  { %634 = vadd.xlane.f32.xlu1 %v633_v29 }
 0x637   :  { %v3022_v30 = vpop.eup %3021 }
 0x638   :  { %v801_v31 = vsel %vm287_vm4, %v3022_v30, 0.0 }
 0x639   :  { %802 = vadd.xlane.f32.xlu0 %v801_v31 }
 0x646   :  { %806 = vrot.lane.b32.xlu1 %v3293_v49, %s3704_s0 }
 0x64f   :  { %638 = vrot.lane.b32.xlu0 %v3293_v49, %s3702_s9 }
 0x6be   :  { %v464_v32 = vpop.xlane.xlu0 %463 }
 0x6bf   :  { %3023 = vrcp.f32 %v464_v32 }
 0x6c2   :  { %v635_v33 = vpop.xlane.xlu1 %634 }
 0x6c3   :  { %3025 = vrcp.f32 %v635_v33  ;;  %v2987_v33 = vld [vmem:[%s3680_s13] sm:$0xff]  }
 0x6c6   :  { %v803_v34 = vpop.xlane.xlu0 %802  ;;  %v807_v42 = vpop.permute.xlu1 %806 }
 0x6c7   :  { %3027 = vrcp.f32 %v803_v34  ;;  %v2988_v34 = vld [vmem:[%s3680_s13 + $0x8] sm:$0xff]  }
 0x6c9   :  { %v3024_v35 = vpop.eup %3023 }
 0x6ca   :  { %v466_v36 = vmul.f32 %v3024_v35, %v3018_v26  ;;  %v639_v37 = vpop.permute.xlu0 %638  ;;  %v2989_v35 = vld [vmem:[%s3680_s13 + $0x10] sm:$0xff]  }
 0x6cc   :  { %2814 = vmatmul.mubr.msk.f32.vlgmr.msra.gmra.mrb[4].mxu0 %vm287_vm4, %v466_v36  ;;  %v2990_v36 = vld [vmem:[%s3680_s13 + $0x18] sm:$0xff]  }
 0x6cd   :  { %v3026_v40 = vpop.eup %3025  ;;  %2822 = vmatpush3.msra.mxu0 %v639_v37  ;;  %2823 = vmatprep.mubr.msk.f32.mxu0 %vm3096_vm1, %v3095_v22  ;;  %v2626_v37 = vld [vmem:[%s3679_s12] ss:$0 sm:$0xff] }
 0x6ce   :  { %v637_v41 = vmul.f32 %v3026_v40, %v3020_v28  ;;  %2831 = vmatprep.subr.mxu0 %v3095_v22  ;;  %v2625_v28 = vld [vmem:[%s3677_s10] ss:$0 sm:$0xff] }
 0x6d0   :  { %2824 = vmatmul.mubr.msk.f32.vlgmr.msra.gmra.mrb[6].mxu0 %vm287_vm4, %v637_v41 }
 0x6d1   :  { %v3028_v43 = vpop.eup %3027  ;;  %2832 = vmatpush3.msra.mxu0 %v807_v42  ;;  %2833 = vmatprep.mubr.msk.f32.mxu0 %vm3096_vm1, %v3095_v22 }
 0x6d2   :  { %v805_v44 = vmul.f32 %v3028_v43, %v3022_v30  ;;  %2844 = vmatprep.subr.bf16.mxu0 %v3095_v22 }
 0x6d4   :  { %2834 = vmatmul.mubr.msk.f32.vlgmr.msra.gmra.mrb[8].mxu0 %vm287_vm4, %v805_v44 }
 0x6d5   :  { %2848 = vmatprep.mubr.msk.bf16.mxu0 %vm3096_vm1, %v3095_v22 }
 0x79f   :  { %v539_v47 = vpop.f32.mrb[4].mxu0 }
 0x7a0   :  { %544 = vrot.lane.b32.xlu1 %v539_v47, %s3700_s3  ;;  %v2815_v48 = vpop.f32.mrb[5].mxu0 }
 0x7a3   :  { %v710_v49 = vpop.f32.mrb[6].mxu0 }
 0x7a4   :  { %714 = vst.msk [vmem:[#allocation3 + $0x8] sm:$0xff] %vm212_vm3, %v710_v49  ;;  %v2825_v50 = vpop.f32.mrb[7].mxu0 }
 0x7a7   :  { %v878_v51 = vpop.f32.mrb[8].mxu0 }
 0x7a8   :  { %883 = vrot.lane.b32.xlu1 %v878_v51, %s3700_s3  ;;  %v2835_v52 = vpop.f32.mrb[9].mxu0 }
 0x812   :  { %v545_v53 = vpop.permute.xlu1 %544 }
 0x813   :  { %548 = vst.msk [vmem:[#allocation3] sm:$0xff] %vm547_vm5, %v545_v53 }
 0x81a   :  { %v884_v54 = vpop.permute.xlu1 %883  ;;  %v887_v55 = vld [vmem:[#allocation3] sm:$0xff] }
 0x81b   :  { %886 = vst.msk [vmem:[#allocation3 + $0x8] sm:$0xff] %vm547_vm5, %v884_v54 }
 0x822   :  { %v888_v56 = vld [vmem:[#allocation3 + $0x8] sm:$0xff] }
 0x823   :  { %v893_v57 = vpack.c.bf16 %v888_v56, %v887_v55 }
 0x825   :  { %2841 = vmatmul.mubr.msk.bf16.vlgmr.msra.gmra.mrb[12].mxu1 %vm93_vm0, %v893_v57 }
 0x826   :  { %2860 = vmatprep.mubr.msk.bf16.mxu1 %vm3096_vm1, %v3095_v22  ;;  %2853 = vmatpush3.bf16.msra.mxu1 %v2987_v33 }
 0x827   :  { %2854 = vmatprep.subr.bf16.mxu1 %v3095_v22 }
 0x82a   :  { %2855 = vmatpush3.bf16.msra.mxu1 %v2988_v34 }
 0x82b   :  { %2856 = vmatprep.subr.bf16.mxu1 %v3095_v22 }
 0x82e   :  { %2857 = vmatpush3.bf16.msra.mxu1 %v2989_v35  ;;  %v2637_v35 = vld [vmem:[%s3683_s16] ss:$0 sm:$0xff] }
 0x82f   :  { %2858 = vmatprep.subr.bf16.mxu1 %v3095_v22 }
 0x832   :  { %2859 = vmatpush3.bf16.msra.mxu1 %v2990_v36 }
 0x833   :  { %2882 = vmatprep.subr.mxu1 %v3095_v22 }
 0x8f8   :  { %v950_v59 = vpop.f32.mrb[12].mxu1 }
 0x8f9   :  { %v951_v60 = vadd.f32 %v2620_v58, %v950_v59  ;;  %v2842_v61 = vpop.f32.mrb[13].mxu1 }
 0x8fa   :  { %v953_v62 = vpop.f32.mrb[14].mxu1 }
 0x8fb   :  { %v954_v63 = vadd.f32 %v2620_v58, %v953_v62  ;;  %v2843_v0 = vpop.f32.mrb[15].mxu1  ;;  %v957_v1 = vadd.f32 %v951_v60, %v3273_v38 }
 0x8fd   :  { %v961_v2 = vsel %vm93_vm0, %v957_v1, 0.0  ;;  %v958_v3 = vadd.f32 %v954_v63, %v3275_v39  ;;  %v2985_v39 = vld [vmem:[%s3678_s11] sm:$0xff]  }
 0x8fe   :  { %962 = vadd.xlane.f32.xlu0 %v961_v2  ;;  %2845 = vmatpush3.bf16.msra.mxu0 %v2985_v39 }
 0x8ff   :  { %v964_v4 = vsel %vm93_vm0, %v958_v3, 0.0  ;;  %2846 = vmatprep.subr.bf16.mxu0 %v3095_v22 }
 0x900   :  { %965 = vadd.xlane.f32.xlu1 %v964_v4 }
 0x902   :  { %2847 = vmatpush3.bf16.msra.mxu0 %v2986_v14 }
 0x903   :  { %2864 = vmatprep.subr.bf16.mxu0 %v3095_v22 }
 0x98b   :  { %v963_v5 = vpop.xlane.xlu0 %962 }
 0x98c   :  { %v967_v6 = vmul.f32 0.03125, %v963_v5 }
 0x98d   :  { %v966_v7 = vpop.xlane.xlu1 %965 }
 0x98e   :  { %v969_v8 = vsub.f32 %v957_v1, %v967_v6  ;;  %v968_v9 = vmul.f32 0.03125, %v966_v7  ;;  %v2630_v1 = vld [vmem:[%s3681_s14] ss:$0 sm:$0xff] }
 0x990   :  { %v970_v10 = vsub.f32 %v958_v3, %v968_v9  ;;  %v971_v11 = vmul.f32 %v969_v8, %v969_v8 }
 0x992   :  { %v973_v12 = vsel %vm93_vm0, %v971_v11, 0.0  ;;  %v972_v13 = vmul.f32 %v970_v10, %v970_v10 }
 0x993   :  { %974 = vadd.xlane.f32.xlu0 %v973_v12 }
 0x994   :  { %v976_v38 = vsel %vm93_vm0, %v972_v13, 0.0 }
 0x997   :  { %977 = vadd.xlane.f32.xlu0 %v976_v38 }
 0xa20   :  { %v975_v15 = vpop.xlane.xlu0 %974 }
 0xa21   :  { %v979_v16 = vmul.f32 0.03125, %v975_v15 }
 0xa23   :  { %v981_v17 = vadd.f32 1e-12, %v979_v16 }
 0xa24   :  { %v978_v18 = vpop.xlane.xlu0 %977 }
 0xa25   :  { %3029 = vrsqrt.f32 %v981_v17  ;;  %v980_v19 = vmul.f32 0.03125, %v978_v18 }
 0xa27   :  { %v982_v20 = vadd.f32 1e-12, %v980_v19 }
 0xa29   :  { %3031 = vrsqrt.f32 %v982_v20  ;;  %v2991_v20 = vld [vmem:[%s3720_s5 + $0x10] sm:$0xff]  }
 0xa2f   :  { %v3030_v21 = vpop.eup %3029 }
 0xa30   :  { %v985_v23 = vmul.f32 %v3030_v21, %v969_v8  ;;  %v2992_v21 = vld [vmem:[%s3720_s5 + $0x18] sm:$0xff]  }
 0xa32   :  { %v993_v26 = vmul.f32 %v2624_v24, %v985_v23 }
 0xa33   :  { %v3032_v25 = vpop.eup %3031 }
 0xa34   :  { %v986_v27 = vmul.f32 %v3032_v25, %v970_v10  ;;  %v1001_v30 = vadd.f32 %v2625_v28, %v993_v26 }
 0xa36   :  { %v994_v29 = vmul.f32 %v2624_v24, %v986_v27 }
 0xa38   :  { %v1002_v31 = vadd.f32 %v2625_v28, %v994_v29 }
 0xa3a   :  { %v1007_v32 = vpack.c.bf16 %v1002_v31, %v1001_v30 }
 0xa3c   :  { %2849 = vmatmul.mubr.msk.bf16.vlgmr.msra.gmra.mrb[12].mxu0 %vm93_vm0, %v1007_v32 }
 0xa3d   :  { %2868 = vmatprep.mubr.msk.bf16.mxu0 %vm3096_vm1, %v3095_v22  ;;  %2865 = vmatpush3.bf16.msra.mxu0 %v2991_v20 }
 0xa3e   :  { %2866 = vmatprep.subr.bf16.mxu0 %v3095_v22 }
 0xa41   :  { %2867 = vmatpush3.bf16.msra.mxu0 %v2992_v21 }
 0xa42   :  { %2872 = vmatprep.subr.mxu0 %v3095_v22 }
 0xb0f   :  { %v1064_v40 = vpop.f32.mrb[12].mxu0 }
 0xb10   :  { %v1065_v41 = vadd.f32 %v2626_v37, %v1064_v40  ;;  %v2850_v42 = vpop.f32.mrb[13].mxu0 }
 0xb11   :  { %v1067_v43 = vpop.f32.mrb[14].mxu0  ;;  %v2643_v42 = vld [vmem:[%s3723_s27 + $0x1] ss:$0 sm:$0xff]  ;;  %s3727_s27 = smov 48  }
 0xb12   :  { %v1073_v44 = vmul.f32 0.044715, %v1065_v41  ;;  %v1068_v45 = vadd.f32 %v2626_v37, %v1067_v43  ;;  %v2851_v46 = vpop.f32.mrb[15].mxu0  ;;  %v1071_v59 = vmul.f32 0.5, %v1065_v41 }
 0xb14   :  { %v1075_v47 = vmul.f32 %v1073_v44, %v1065_v41  ;;  %v1074_v48 = vmul.f32 0.044715, %v1068_v45  ;;  %v1072_v60 = vmul.f32 0.5, %v1068_v45 }
 0xb16   :  { %v1077_v49 = vmul.f32 %v1075_v47, %v1065_v41  ;;  %v1076_v50 = vmul.f32 %v1074_v48, %v1068_v45 }
 0xb18   :  { %v1079_v51 = vadd.f32 %v1077_v49, %v1065_v41  ;;  %v1078_v52 = vmul.f32 %v1076_v50, %v1068_v45 }
 0xb1a   :  { %v1081_v53 = vmul.f32 0.7978846, %v1079_v51  ;;  %v1080_v54 = vadd.f32 %v1078_v52, %v1068_v45 }
 0xb1c   :  { %3033 = vtanh.f32 %v1081_v53  ;;  %v1082_v55 = vmul.f32 0.7978846, %v1080_v54 }
 0xb1e   :  { %3035 = vtanh.f32 %v1082_v55 }
 0xb26   :  { %v3034_v56 = vpop.eup %3033 }
 0xb27   :  { %v1085_v57 = vadd.f32 1.0, %v3034_v56 }
 0xb28   :  { %v3036_v58 = vpop.eup %3035 }
 0xb29   :  { %v1086_v61 = vadd.f32 1.0, %v3036_v58  ;;  %v1087_v62 = vmul.f32 %v1085_v57, %v1071_v59 }
 0xb2b   :  { %v1088_v63 = vmul.f32 %v1086_v61, %v1072_v60 }
 0xb2d   :  { %v1097_v0 = vpack.c.bf16 %v1088_v63, %v1087_v62 }
 0xb2f   :  { %2861 = vmatmul.mubr.msk.bf16.vlgmr.msra.gmra.mrb[16].mxu1 %vm1129_vm6, %v1097_v0 }
 0xb30   :  { %2884 = vmatprep.mubr.msk.f32.mxu1 %vm3096_vm1, %v3095_v22 }
 0xc02   :  { %v1167_v2 = vpop.f32.mrb[16].mxu1 }
 0xc03   :  { %v1168_v3 = vadd.f32 %v2630_v1, %v1167_v2  ;;  %v2862_v4 = vpop.f32.mrb[17].mxu1 }
 0xc04   :  { %v1170_v5 = vpop.f32.mrb[18].mxu1 }
 0xc05   :  { %v1171_v6 = vadd.f32 %v2630_v1, %v1170_v5  ;;  %v2863_v7 = vpop.f32.mrb[19].mxu1  ;;  %v1174_v8 = vadd.f32 %v1168_v3, %v1001_v30  ;;  %v2636_v30 = vld [vmem:[%s3682_s15] ss:$0 sm:$0xff] }
 0xc07   :  { %v1178_v9 = vsel %vm93_vm0, %v1174_v8, 0.0  ;;  %v1175_v10 = vadd.f32 %v1171_v6, %v1002_v31 }
 0xc08   :  { %1179 = vadd.xlane.f32.xlu0 %v1178_v9 }
 0xc09   :  { %v1181_v11 = vsel %vm93_vm0, %v1175_v10, 0.0 }
 0xc0a   :  { %1182 = vadd.xlane.f32.xlu1 %v1181_v11 }
 0xc95   :  { %v1180_v12 = vpop.xlane.xlu0 %1179 }
 0xc96   :  { %v1184_v13 = vmul.f32 0.03125, %v1180_v12 }
 0xc97   :  { %v1183_v38 = vpop.xlane.xlu1 %1182 }
 0xc98   :  { %v1186_v39 = vsub.f32 %v1174_v8, %v1184_v13  ;;  %v1185_v14 = vmul.f32 0.03125, %v1183_v38 }
 0xc9a   :  { %v1187_v15 = vsub.f32 %v1175_v10, %v1185_v14  ;;  %v1188_v16 = vmul.f32 %v1186_v39, %v1186_v39 }
 0xc9c   :  { %v1190_v17 = vsel %vm93_vm0, %v1188_v16, 0.0  ;;  %v1189_v18 = vmul.f32 %v1187_v15, %v1187_v15 }
 0xc9d   :  { %1191 = vadd.xlane.f32.xlu0 %v1190_v17 }
 0xc9e   :  { %v1193_v19 = vsel %vm93_vm0, %v1189_v18, 0.0 }
 0xc9f   :  { %1194 = vadd.xlane.f32.xlu1 %v1193_v19 }
 0xd2a   :  { %v1192_v23 = vpop.xlane.xlu0 %1191 }
 0xd2b   :  { %v1196_v24 = vmul.f32 0.03125, %v1192_v23 }
 0xd2c   :  { %v1195_v25 = vpop.xlane.xlu1 %1194 }
 0xd2d   :  { %v1198_v26 = vadd.f32 1e-12, %v1196_v24  ;;  %v1197_v27 = vmul.f32 0.03125, %v1195_v25 }
 0xd2f   :  { %3037 = vrsqrt.f32 %v1198_v26  ;;  %v1199_v28 = vadd.f32 1e-12, %v1197_v27 }
 0xd31   :  { %3039 = vrsqrt.f32 %v1199_v28 }
 0xd39   :  { %v3038_v29 = vpop.eup %3037 }
 0xd3a   :  { %v1202_v31 = vmul.f32 %v3038_v29, %v1186_v39 }
 0xd3b   :  { %v3040_v32 = vpop.eup %3039 }
 0xd3c   :  { %v1210_v33 = vmul.f32 %v2636_v30, %v1202_v31  ;;  %v1203_v34 = vmul.f32 %v3040_v32, %v1187_v15 }
 0xd3e   :  { %v1211_v36 = vmul.f32 %v2636_v30, %v1203_v34  ;;  %v3443_v37 = vadd.f32 %v2637_v35, %v1210_v33 }
 0xd40   :  { %v3445_v40 = vadd.f32 %v2637_v35, %v1211_v36 }
 0xd42   :  { %v1225_v41 = vpack.c.bf16 %v3445_v40, %v3443_v37 }
 0xd44   :  { %2869 = vmatmul.mubr.msk.bf16.vlgmr.msra.gmra.mrb[16].mxu0 %vm93_vm0, %v1225_v41 }
 0xd45   :  { %2874 = vmatprep.mubr.msk.f32.mxu0 %vm3096_vm1, %v3095_v22 }
 0xe17   :  { %v1283_v43 = vpop.f32.mrb[16].mxu0 }
 0xe18   :  { %v1284_v44 = vadd.f32 %v2643_v42, %v1283_v43  ;;  %v2870_v45 = vpop.f32.mrb[17].mxu0 }
 0xe19   :  { %v1286_v46 = vpop.f32.mrb[18].mxu0 }
 0xe1a   :  { %1290 = vst.msk [vmem:[#allocation2] sm:$0xff] %vm205_vm2, %v1284_v44  ;;  %v1287_v47 = vadd.f32 %v2643_v42, %v1286_v46  ;;  %v2871_v48 = vpop.f32.mrb[19].mxu0 }
 0xe1c   :  { %1291 = vst.msk [vmem:[#allocation2 + $0x8] sm:$0xff] %vm205_vm2, %v1287_v47 }
 0xe21   :  { %v3457_v49 = vld [vmem:[#allocation2] sm:$0xff] }
 0xe22   :  { %1462 = vrot.lane.b32.xlu1 %v3457_v49, %s3098_s28  ;;  %1294 = vrot.lane.b32.xlu0 %v3457_v49, %s3097_s4 }
 0xe23   :  { %v3463_v50 = vld [vmem:[#allocation2 + $0x8] sm:$0xff] }
 0xe26   :  { %1460 = vrot.lane.b32.xlu1 %v3457_v49, %s3099_s20  ;;  %1800 = vrot.lane.b32.xlu0 %v3463_v50, %s3098_s28  ;;  %s3729_s28 = smov 16  }
 0xe2a   :  { %1632 = vrot.lane.b32.xlu1 %v3463_v50, %s3097_s4  ;;  %s3728_s4 = smov 64  }
 0xe2e   :  { %1798 = vrot.lane.b32.xlu1 %v3463_v50, %s3099_s20 }
 0xe94   :  { %v1463_v51 = vpop.permute.xlu1 %1462  ;;  %v1295_v52 = vpop.permute.xlu0 %1294 }
 0xe95   :  { %2873 = vmatpush3.xpose.msk.msra.mxu0 %vm212_vm3, %v1295_v52  ;;  %2883 = vmatpush3.xpose.msk.msra.mxu1 %vm212_vm3, %v1463_v51  ;;  %v2994_v51 = vld [vmem:[%s3724_s6 + $0x18] sm:$0xff]  }
 0xe96   :  { %2892 = vmatprep.subr.mxu1 %v3095_v22  ;;  %2877 = vmatprep.subr.mxu0 %v3095_v22 }
 0xe98   :  { %v1461_v53 = vpop.permute.xlu1 %1460  ;;  %2875 = vmatmul.mubr.msk.f32.vlgmr.msra.gmra.mrb[10].mxu0 %vm212_vm3, %v3457_v49  ;;  %v1801_v55 = vpop.permute.xlu0 %1800 }
 0xe99   :  { %2885 = vmatmul.mubr.msk.f32.vlgmr.msra.gmra.mrb[10].mxu1 %vm212_vm3, %v1461_v53  ;;  %2879 = vmatprep.mubr.msk.f32.mxu0 %vm3096_vm1, %v3095_v22 }
 0xe9a   :  { %2894 = vmatprep.mubr.msk.f32.mxu1 %vm3096_vm1, %v3095_v22 }
 0xe9c   :  { %v1633_v54 = vpop.permute.xlu1 %1632 }
 0xe9d   :  { %2893 = vmatpush3.xpose.msk.msra.mxu1 %vm212_vm3, %v1633_v54 }
 0xe9e   :  { %2902 = vmatprep.subr.mxu1 %v3095_v22 }
 0xea0   :  { %2895 = vmatmul.mubr.msk.f32.vlgmr.msra.gmra.mrb[20].mxu1 %vm212_vm3, %v3463_v50  ;;  %v1799_v56 = vpop.permute.xlu1 %1798 }
 0xea1   :  { %2903 = vmatpush3.xpose.msk.msra.mxu1 %vm212_vm3, %v1801_v55  ;;  %2904 = vmatprep.mubr.msk.f32.mxu1 %vm3096_vm1, %v3095_v22 }
 0xea2   :  { %2912 = vmatprep.subr.bf16.mxu1 %v3095_v22 }
 0xea4   :  { %2905 = vmatmul.mubr.msk.f32.vlgmr.msra.gmra.mrb[22].mxu1 %vm212_vm3, %v1799_v56 }
 0xea5   :  { %2916 = vmatprep.mubr.msk.bf16.mxu1 %vm3096_vm1, %v3095_v22 }
 0xf6b   :  { %v1366_v57 = vpop.f32.mrb[10].mxu0 }
 0xf6c   :  { %v2876_v58 = vpop.f32.mrb[11].mxu0  ;;  %v1534_v59 = vpop.f32.mrb[10].mxu1  ;;  %v1370_v60 = vsel %vm287_vm4, %v1366_v57, -inf }
 0xf6d   :  { %v2886_v61 = vpop.f32.mrb[11].mxu1  ;;  %1371 = vmax.xlane.f32.xlu0 %v1370_v60  ;;  %v1538_v62 = vsel %vm287_vm4, %v1534_v59, -inf }
 0xf6e   :  { %1539 = vmax.xlane.f32.xlu1 %v1538_v62 }
 0xf73   :  { %v1704_v63 = vpop.f32.mrb[20].mxu1 }
 0xf74   :  { %v2896_v0 = vpop.f32.mrb[21].mxu1  ;;  %v1708_v1 = vsel %vm287_vm4, %v1704_v63, -inf }
 0xf75   :  { %1709 = vmax.xlane.f32.xlu0 %v1708_v1 }
 0xf77   :  { %v1872_v2 = vpop.f32.mrb[22].mxu1 }
 0xf78   :  { %v2906_v3 = vpop.f32.mrb[23].mxu1  ;;  %v1876_v4 = vsel %vm287_vm4, %v1872_v2, -inf }
 0xf79   :  { %1877 = vmax.xlane.f32.xlu0 %v1876_v4 }
 0xffa   :  { %v1372_v5 = vpop.xlane.xlu0 %1371 }
 0xffb   :  { %v1373_v6 = vsub.f32 %v1366_v57, %v1372_v5  ;;  %v1540_v7 = vpop.xlane.xlu1 %1539 }
 0xffc   :  { %v1541_v8 = vsub.f32 %v1534_v59, %v1540_v7  ;;  %v2664_v59 = vld [vmem:[%s3725_s8 + $0x1] ss:$0 sm:$0xff] }
 0xffd   :  { %v1374_v9 = vmul.f32 1.442695, %v1373_v6 }
 0xffe   :  { %v1542_v10 = vmul.f32 1.442695, %v1541_v8 }
 0xfff   :  { %3041 = vpow2.f32 %v1374_v9 }
0x1000   :  { %3043 = vpow2.f32 %v1542_v10 }
0x1002   :  { %v1710_v11 = vpop.xlane.xlu0 %1709 }
0x1003   :  { %v1711_v12 = vsub.f32 %v1704_v63, %v1710_v11 }
0x1005   :  { %v1712_v13 = vmul.f32 1.442695, %v1711_v12 }
0x1006   :  { %v1878_v18 = vpop.xlane.xlu0 %1877 }
0x1007   :  { %3045 = vpow2.f32 %v1712_v13  ;;  %v1879_v19 = vsub.f32 %v1872_v2, %v1878_v18 }
0x1009   :  { %v3042_v38 = vpop.eup %3041  ;;  %v1880_v20 = vmul.f32 1.442695, %v1879_v19 }
0x100a   :  { %v3044_v39 = vpop.eup %3043  ;;  %v1376_v14 = vsel %vm287_vm4, %v3042_v38, 0.0 }
0x100b   :  { %1377 = vadd.xlane.f32.xlu0 %v1376_v14  ;;  %v1544_v15 = vsel %vm287_vm4, %v3044_v39, 0.0  ;;  %3047 = vpow2.f32 %v1880_v20 }
0x100c   :  { %1545 = vadd.xlane.f32.xlu1 %v1544_v15 }
0x1011   :  { %v3046_v16 = vpop.eup %3045 }
0x1012   :  { %v1714_v17 = vsel %vm287_vm4, %v3046_v16, 0.0 }
0x1013   :  { %1715 = vadd.xlane.f32.xlu0 %v1714_v17 }
0x1015   :  { %v3048_v21 = vpop.eup %3047 }
0x1016   :  { %v1882_v23 = vsel %vm287_vm4, %v3048_v21, 0.0 }
0x101d   :  { %1549 = vrot.lane.b32.xlu1 %v3457_v49, %s3727_s27 }
0x1021   :  { %1719 = vrot.lane.b32.xlu1 %v3463_v50, %s3728_s4 }
0x1029   :  { %1381 = vrot.lane.b32.xlu0 %v3457_v49, %s3728_s4 }
0x1045   :  { %1883 = vadd.xlane.f32.xlu1 %v1882_v23  ;;  %v2670_v23 = vld [vmem:[%s3726_s29 + $0x1] ss:$0 sm:$0xff] }
0x1056   :  { %1887 = vrot.lane.b32.xlu1 %v3463_v50, %s3727_s27  ;;  %v2993_v50 = vld [vmem:[%s3724_s6 + $0x10] sm:$0xff]  }
0x1057   :  { %2913 = vmatpush3.bf16.msra.mxu1 %v2993_v50 }
0x1058   :  { %2914 = vmatprep.subr.bf16.mxu1 %v3095_v22 }
0x105b   :  { %2915 = vmatpush3.bf16.msra.mxu1 %v2994_v51 }
0x105c   :  { %2928 = vmatprep.subr.bf16.mxu1 %v3095_v22 }
0x1098   :  { %v1378_v24 = vpop.xlane.xlu0 %1377 }
0x1099   :  { %3049 = vrcp.f32 %v1378_v24  ;;  %v1546_v25 = vpop.xlane.xlu1 %1545 }
0x109a   :  { %3051 = vrcp.f32 %v1546_v25 }
0x109d   :  { %v1550_v29 = vpop.permute.xlu1 %1549 }
0x10a0   :  { %v1716_v26 = vpop.xlane.xlu0 %1715 }
0x10a1   :  { %3053 = vrcp.f32 %v1716_v26  ;;  %v1720_v33 = vpop.permute.xlu1 %1719 }
0x10a3   :  { %v3050_v27 = vpop.eup %3049 }
0x10a4   :  { %v1380_v28 = vmul.f32 %v3050_v27, %v3042_v38  ;;  %v1382_v30 = vpop.permute.xlu0 %1381  ;;  %v3052_v31 = vpop.eup %3051  ;;  %v2671_v27 = vld [vmem:[%s3677_s10 + $0x1] ss:$0 sm:$0xff] }
0x10a5   :  { %2878 = vmatpush3.msra.mxu0 %v1382_v30  ;;  %v1548_v32 = vmul.f32 %v3052_v31, %v3044_v39  ;;  %v2996_v39 = vld [vmem:[%s3678_s11 + $0x18] sm:$0xff]  }
0x10a6   :  { %2880 = vmatmul.mubr.msk.f32.vlgmr.msra.gmra.mrb[20].mxu0 %vm287_vm4, %v1380_v28  ;;  %2887 = vmatprep.subr.mxu0 %v3095_v22 }
0x10a7   :  { %2888 = vmatpush3.msra.mxu0 %v1550_v29  ;;  %2889 = vmatprep.mubr.msk.f32.mxu0 %vm3096_vm1, %v3095_v22 }
0x10a8   :  { %2897 = vmatprep.subr.mxu0 %v3095_v22 }
0x10aa   :  { %2890 = vmatmul.mubr.msk.f32.vlgmr.msra.gmra.mrb[22].mxu0 %vm287_vm4, %v1548_v32  ;;  %v2997_v32 = vld [vmem:[%s3680_s13 + $0x20] sm:$0xff]  }
0x10ab   :  { %v3054_v34 = vpop.eup %3053  ;;  %2898 = vmatpush3.msra.mxu0 %v1720_v33  ;;  %2899 = vmatprep.mubr.msk.f32.mxu0 %vm3096_vm1, %v3095_v22  ;;  %v2998_v33 = vld [vmem:[%s3680_s13 + $0x28] sm:$0xff]  }
0x10ac   :  { %v1718_v35 = vmul.f32 %v3054_v34, %v3046_v16  ;;  %2907 = vmatprep.subr.mxu0 %v3095_v22  ;;  %v2999_v34 = vld [vmem:[%s3680_s13 + $0x30] sm:$0xff]  }
0x10ae   :  { %2900 = vmatmul.mubr.msk.f32.vlgmr.msra.gmra.mrb[24].mxu0 %vm287_vm4, %v1718_v35  ;;  %v3000_v35 = vld [vmem:[%s3680_s13 + $0x38] sm:$0xff]  }
0x10af   :  { %2909 = vmatprep.mubr.msk.f32.mxu0 %vm3096_vm1, %v3095_v22 }
0x10d2   :  { %v1884_v36 = vpop.xlane.xlu1 %1883 }
0x10d3   :  { %3055 = vrcp.f32 %v1884_v36  ;;  %v2677_v36 = vld [vmem:[%s3679_s12 + $0x1] ss:$0 sm:$0xff] }
0x10d6   :  { %v1888_v41 = vpop.permute.xlu1 %1887 }
0x10d7   :  { %2908 = vmatpush3.msra.mxu0 %v1888_v41 }
0x10d8   :  { %2920 = vmatprep.subr.bf16.mxu0 %v3095_v22 }
0x10dd   :  { %v3056_v42 = vpop.eup %3055 }
0x10de   :  { %v1886_v43 = vmul.f32 %v3056_v42, %v3048_v21 }
0x10e0   :  { %2910 = vmatmul.mubr.msk.f32.vlgmr.msra.gmra.mrb[26].mxu0 %vm287_vm4, %v1886_v43 }
0x10e1   :  { %2924 = vmatprep.mubr.msk.bf16.mxu0 %vm3096_vm1, %v3095_v22 }
0x1179   :  { %v1453_v44 = vpop.f32.mrb[20].mxu0 }
0x117a   :  { %1457 = vst.msk [vmem:[#allocation3] sm:$0xff] %vm212_vm3, %v1453_v44  ;;  %v2881_v45 = vpop.f32.mrb[21].mxu0 }
0x117d   :  { %v1621_v46 = vpop.f32.mrb[22].mxu0 }
0x117e   :  { %1626 = vrot.lane.b32.xlu0 %v1621_v46, %s3729_s28  ;;  %v2891_v47 = vpop.f32.mrb[23].mxu0 }
0x1181   :  { %v1791_v48 = vpop.f32.mrb[24].mxu0 }
0x1182   :  { %1795 = vst.msk [vmem:[#allocation3 + $0x8] sm:$0xff] %vm212_vm3, %v1791_v48  ;;  %v2901_v49 = vpop.f32.mrb[25].mxu0 }
0x11b3   :  { %v1959_v52 = vpop.f32.mrb[26].mxu0 }
0x11b4   :  { %1964 = vrot.lane.b32.xlu1 %v1959_v52, %s3729_s28  ;;  %v2911_v53 = vpop.f32.mrb[27].mxu0 }
0x11f0   :  { %v1627_v54 = vpop.permute.xlu0 %1626 }
0x11f1   :  { %1629 = vst.msk [vmem:[#allocation3] sm:$0xff] %vm547_vm5, %v1627_v54 }
0x11f8   :  { %v1968_v56 = vld [vmem:[#allocation3] sm:$0xff] }
0x1226   :  { %v1965_v55 = vpop.permute.xlu1 %1964 }
0x1227   :  { %1967 = vst.msk [vmem:[#allocation3 + $0x8] sm:$0xff] %vm547_vm5, %v1965_v55 }
0x122e   :  { %v1969_v57 = vld [vmem:[#allocation3 + $0x8] sm:$0xff] }
0x122f   :  { %v1975_v58 = vpack.c.bf16 %v1969_v57, %v1968_v56 }
0x1231   :  { %2917 = vmatmul.mubr.msk.bf16.vlgmr.msra.gmra.mrb[24].mxu1 %vm93_vm0, %v1975_v58 }
0x1232   :  { %2936 = vmatprep.mubr.msk.bf16.mxu1 %vm3096_vm1, %v3095_v22  ;;  %2929 = vmatpush3.bf16.msra.mxu1 %v2997_v32 }
0x1233   :  { %2930 = vmatprep.subr.bf16.mxu1 %v3095_v22 }
0x1236   :  { %2931 = vmatpush3.bf16.msra.mxu1 %v2998_v33 }
0x1237   :  { %2932 = vmatprep.subr.bf16.mxu1 %v3095_v22 }
0x123a   :  { %2933 = vmatpush3.bf16.msra.mxu1 %v2999_v34 }
0x123b   :  { %2934 = vmatprep.subr.bf16.mxu1 %v3095_v22 }
0x123e   :  { %2935 = vmatpush3.bf16.msra.mxu1 %v3000_v35  ;;  %v2699_v35 = vld [vmem:[%s3683_s16 + $0x1] ss:$0 sm:$0xff] }
0x123f   :  { %2956 = vmatprep.subr.bf16.mxu1 %v3095_v22 }
0x1304   :  { %v2033_v60 = vpop.f32.mrb[24].mxu1 }
0x1305   :  { %v2034_v61 = vadd.f32 %v2664_v59, %v2033_v60  ;;  %v2918_v62 = vpop.f32.mrb[25].mxu1 }
0x1306   :  { %v2036_v63 = vpop.f32.mrb[26].mxu1 }
0x1307   :  { %v2037_v0 = vadd.f32 %v2664_v59, %v2036_v63  ;;  %v2919_v1 = vpop.f32.mrb[27].mxu1  ;;  %v2040_v2 = vadd.f32 %v2034_v61, %v3443_v37 }
0x1309   :  { %v2046_v3 = vsel %vm93_vm0, %v2040_v2, 0.0  ;;  %v2041_v4 = vadd.f32 %v2037_v0, %v3445_v40  ;;  %v2995_v40 = vld [vmem:[%s3678_s11 + $0x10] sm:$0xff]  }
0x130a   :  { %2047 = vadd.xlane.f32.xlu0 %v2046_v3  ;;  %2921 = vmatpush3.bf16.msra.mxu0 %v2995_v40 }
0x130b   :  { %v2049_v5 = vsel %vm93_vm0, %v2041_v4, 0.0  ;;  %2922 = vmatprep.subr.bf16.mxu0 %v3095_v22 }
0x130c   :  { %2050 = vadd.xlane.f32.xlu1 %v2049_v5 }
0x130e   :  { %2923 = vmatpush3.bf16.msra.mxu0 %v2996_v39 }
0x130f   :  { %2940 = vmatprep.subr.bf16.mxu0 %v3095_v22 }
0x1397   :  { %v2048_v6 = vpop.xlane.xlu0 %2047 }
0x1398   :  { %v2052_v7 = vmul.f32 0.03125, %v2048_v6 }
0x1399   :  { %v2051_v8 = vpop.xlane.xlu1 %2050 }
0x139a   :  { %v2054_v9 = vsub.f32 %v2040_v2, %v2052_v7  ;;  %v2053_v10 = vmul.f32 0.03125, %v2051_v8  ;;  %v2690_v2 = vld [vmem:[%s3681_s14 + $0x1] ss:$0 sm:$0xff] }
0x139c   :  { %v2055_v11 = vsub.f32 %v2041_v4, %v2053_v10  ;;  %v2056_v12 = vmul.f32 %v2054_v9, %v2054_v9 }
0x139e   :  { %v2058_v13 = vsel %vm93_vm0, %v2056_v12, 0.0  ;;  %v2057_v38 = vmul.f32 %v2055_v11, %v2055_v11 }
0x139f   :  { %2059 = vadd.xlane.f32.xlu0 %v2058_v13 }
0x13a0   :  { %v2061_v37 = vsel %vm93_vm0, %v2057_v38, 0.0 }
0x13a3   :  { %2062 = vadd.xlane.f32.xlu0 %v2061_v37 }
0x142c   :  { %v2060_v14 = vpop.xlane.xlu0 %2059 }
0x142d   :  { %v2064_v15 = vmul.f32 0.03125, %v2060_v14 }
0x142f   :  { %v2066_v16 = vadd.f32 1e-12, %v2064_v15 }
0x1430   :  { %v2063_v17 = vpop.xlane.xlu0 %2062 }
0x1431   :  { %3057 = vrsqrt.f32 %v2066_v16  ;;  %v2065_v18 = vmul.f32 0.03125, %v2063_v17 }
0x1433   :  { %v2067_v19 = vadd.f32 1e-12, %v2065_v18 }
0x1435   :  { %3059 = vrsqrt.f32 %v2067_v19  ;;  %v3001_v19 = vld [vmem:[%s3684_s17] sm:$0xff]  }
0x143b   :  { %v3058_v20 = vpop.eup %3057 }
0x143c   :  { %v2070_v21 = vmul.f32 %v3058_v20, %v2054_v9  ;;  %v3002_v20 = vld [vmem:[%s3684_s17 + $0x8] sm:$0xff]  }
0x143e   :  { %v2078_v25 = vmul.f32 %v2670_v23, %v2070_v21 }
0x143f   :  { %v3060_v24 = vpop.eup %3059 }
0x1440   :  { %v2071_v26 = vmul.f32 %v3060_v24, %v2055_v11  ;;  %v2086_v29 = vadd.f32 %v2671_v27, %v2078_v25 }
0x1442   :  { %v2079_v28 = vmul.f32 %v2670_v23, %v2071_v26 }
0x1444   :  { %v2087_v30 = vadd.f32 %v2671_v27, %v2079_v28 }
0x1446   :  { %v2093_v31 = vpack.c.bf16 %v2087_v30, %v2086_v29 }
0x1448   :  { %2925 = vmatmul.mubr.msk.bf16.vlgmr.msra.gmra.mrb[28].mxu0 %vm93_vm0, %v2093_v31  ;;  %v2698_v31 = vld [vmem:[%s3682_s15 + $0x1] ss:$0 sm:$0xff] }
0x1449   :  { %2944 = vmatprep.mubr.msk.bf16.mxu0 %vm3096_vm1, %v3095_v22  ;;  %2941 = vmatpush3.bf16.msra.mxu0 %v3001_v19 }
0x144a   :  { %2942 = vmatprep.subr.bf16.mxu0 %v3095_v22 }
0x144d   :  { %2943 = vmatpush3.bf16.msra.mxu0 %v3002_v20 }
0x144e   :  { %2948 = vmatprep.subr.bf16.mxu0 %v3095_v22 }
0x151b   :  { %v2151_v41 = vpop.f32.mrb[28].mxu0 }
0x151c   :  { %v2152_v42 = vadd.f32 %v2677_v36, %v2151_v41  ;;  %v2926_v43 = vpop.f32.mrb[29].mxu0 }
0x151d   :  { %v2154_v44 = vpop.f32.mrb[30].mxu0 }
0x151e   :  { %v2160_v45 = vmul.f32 0.044715, %v2152_v42  ;;  %v2155_v46 = vadd.f32 %v2677_v36, %v2154_v44  ;;  %v2927_v47 = vpop.f32.mrb[31].mxu0  ;;  %v2158_v60 = vmul.f32 0.5, %v2152_v42 }
0x151f   :  { %v2700_v47 = vld [vmem:[%s3685_s18] ss:$0 sm:$0xff] }
0x1520   :  { %v2162_v48 = vmul.f32 %v2160_v45, %v2152_v42  ;;  %v2161_v49 = vmul.f32 0.044715, %v2155_v46  ;;  %v2159_v61 = vmul.f32 0.5, %v2155_v46  ;;  %v3003_v45 = vld [vmem:[%s3686_s19] sm:$0xff]  }
0x1522   :  { %v2164_v50 = vmul.f32 %v2162_v48, %v2152_v42  ;;  %v2163_v51 = vmul.f32 %v2161_v49, %v2155_v46 }
0x1524   :  { %v2166_v52 = vadd.f32 %v2164_v50, %v2152_v42  ;;  %v2165_v53 = vmul.f32 %v2163_v51, %v2155_v46 }
0x1526   :  { %v2168_v54 = vmul.f32 0.7978846, %v2166_v52  ;;  %v2167_v55 = vadd.f32 %v2165_v53, %v2155_v46  ;;  %v3004_v46 = vld [vmem:[%s3686_s19 + $0x8] sm:$0xff]  }
0x1528   :  { %3061 = vtanh.f32 %v2168_v54  ;;  %v2169_v56 = vmul.f32 0.7978846, %v2167_v55  ;;  %v3005_v55 = vld [vmem:[%s3688_s21] sm:$0xff]  }
0x152a   :  { %3063 = vtanh.f32 %v2169_v56  ;;  %v3006_v56 = vld [vmem:[%s3688_s21 + $0x8] sm:$0xff]  }
0x1532   :  { %v3062_v57 = vpop.eup %3061 }
0x1533   :  { %v2172_v58 = vadd.f32 1.0, %v3062_v57  ;;  %v2704_v57 = vld [vmem:[%s3730_s2] ss:$0 sm:$0xff] }
0x1534   :  { %v3064_v59 = vpop.eup %3063 }
0x1535   :  { %v2173_v62 = vadd.f32 1.0, %v3064_v59  ;;  %v2174_v63 = vmul.f32 %v2172_v58, %v2158_v60 }
0x1537   :  { %v2175_v0 = vmul.f32 %v2173_v62, %v2159_v61 }
0x1539   :  { %v2185_v1 = vpack.c.bf16 %v2175_v0, %v2174_v63 }
0x153b   :  { %2937 = vmatmul.mubr.msk.bf16.vlgmr.msra.gmra.mrb[28].mxu1 %vm1129_vm6, %v2185_v1  ;;  %v3007_v1 = vld [vmem:[%s3690_s23] sm:$0xff]  }
0x153c   :  { %2960 = vmatprep.mubr.msk.bf16.mxu1 %vm3096_vm1, %v3095_v22  ;;  %2957 = vmatpush3.bf16.msra.mxu1 %v3005_v55 }
0x153d   :  { %2958 = vmatprep.subr.bf16.mxu1 %v3095_v22 }
0x1540   :  { %2959 = vmatpush3.bf16.msra.mxu1 %v3006_v56 }
0x160e   :  { %v2255_v3 = vpop.f32.mrb[28].mxu1 }
0x160f   :  { %v2256_v4 = vadd.f32 %v2690_v2, %v2255_v3  ;;  %v2938_v5 = vpop.f32.mrb[29].mxu1  ;;  %v2708_v3 = vld [vmem:[%s3689_s22] ss:$0 sm:$0xff] }
0x1610   :  { %v2258_v6 = vpop.f32.mrb[30].mxu1 }
0x1611   :  { %v2259_v7 = vadd.f32 %v2690_v2, %v2258_v6  ;;  %v2939_v8 = vpop.f32.mrb[31].mxu1  ;;  %v2262_v9 = vadd.f32 %v2256_v4, %v2086_v29  ;;  %v3008_v2 = vld [vmem:[%s3690_s23 + $0x8] sm:$0xff]   ;;  %s2594_s23 = sshll.u32 %s3103_s7, 4  ;;  %s2595_s23 = int_to_ptr.vmem [resolvable:$true] %s2594_s23 }
0x1612   :  { %s3071_s22 = scalar_lea.vmem %s2595_s23, 32  ;;  %p3076_p1 = scmp.lt.s32.totalorder %s2595_s23, %s2595_s23 }
0x1613   :  { %v2268_v10 = vsel %vm93_vm0, %v2262_v9, 0.0  ;;  %v2263_v11 = vadd.f32 %v2259_v7, %v2087_v30  ;;  %p3072_p0 = scmp.ne.s32.totalorder %s2595_s23, %s3071_s22  ;;  %p3077_p2 = scmp.lt.s32.totalorder %s3071_s22, %s3071_s22 }
0x1614   :  { %2269 = vadd.xlane.f32.xlu1 %v2268_v10 }
0x1615   :  { %v2271_v12 = vsel %vm93_vm0, %v2263_v11, 0.0  ;;  %p3078_p3 = por %p3077_p2, %p3076_p1 }
0x1616   :  { %2272 = vadd.xlane.f32.xlu0 %v2271_v12 }
0x1617   :  { %p3079_p4 = pnand %p3078_p3, %p3072_p0 }
0x16a1   :  { %v2270_v13 = vpop.xlane.xlu1 %2269 }
0x16a2   :  { %v2274_v38 = vmul.f32 0.03125, %v2270_v13 }
0x16a3   :  { %v2273_v37 = vpop.xlane.xlu0 %2272 }
0x16a4   :  { %v2276_v40 = vsub.f32 %v2262_v9, %v2274_v38  ;;  %v2275_v39 = vmul.f32 0.03125, %v2273_v37 }
0x16a6   :  { %v2277_v14 = vsub.f32 %v2263_v11, %v2275_v39  ;;  %v2278_v15 = vmul.f32 %v2276_v40, %v2276_v40 }
0x16a8   :  { %v2280_v16 = vsel %vm93_vm0, %v2278_v15, 0.0  ;;  %v2279_v17 = vmul.f32 %v2277_v14, %v2277_v14 }
0x16a9   :  { %2281 = vadd.xlane.f32.xlu1 %v2280_v16 }
0x16aa   :  { %v2283_v18 = vsel %vm93_vm0, %v2279_v17, 0.0 }
0x16ab   :  { %2284 = vadd.xlane.f32.xlu0 %v2283_v18 }
0x1736   :  { %v2282_v21 = vpop.xlane.xlu1 %2281 }
0x1737   :  { %v2286_v23 = vmul.f32 0.03125, %v2282_v21 }
0x1738   :  { %v2285_v24 = vpop.xlane.xlu0 %2284 }
0x1739   :  { %v2288_v25 = vadd.f32 1e-12, %v2286_v23  ;;  %v2287_v26 = vmul.f32 0.03125, %v2285_v24 }
0x173b   :  { %3065 = vrsqrt.f32 %v2288_v25  ;;  %v2289_v27 = vadd.f32 1e-12, %v2287_v26 }
0x173d   :  { %3067 = vrsqrt.f32 %v2289_v27 }
0x1745   :  { %v3066_v28 = vpop.eup %3065 }
0x1746   :  { %v2292_v29 = vmul.f32 %v3066_v28, %v2276_v40 }
0x1747   :  { %v3068_v30 = vpop.eup %3067 }
0x1748   :  { %v2293_v32 = vmul.f32 %v3068_v30, %v2277_v14  ;;  %v2300_v33 = vmul.f32 %v2698_v31, %v2292_v29 }
0x174a   :  { %v2301_v34 = vmul.f32 %v2698_v31, %v2293_v32  ;;  %v2308_v41 = vadd.f32 %v2699_v35, %v2300_v33 }
0x174c   :  { %v2309_v36 = vadd.f32 %v2699_v35, %v2301_v34 }
0x174e   :  { %v2311_v42 = vrot.slane %v2309_v36, 7 }
0x1750   :  { %v2314_v43 = vsel %vm2313_vm7, %v2308_v41, %v2311_v42 }
0x1751   :  { %v2319_v44 = vpack.c.bf16 %v2314_v43, %v2314_v43 }
0x1753   :  { %2945 = vmatmul.mubr.msk.bf16.vlgmr.msra.gmra.mrb[32].mxu0 %vm93_vm0, %v2319_v44 }
0x1754   :  { %2952 = vmatprep.mubr.msk.bf16.mxu0 %vm3096_vm1, %v3095_v22  ;;  %2949 = vmatpush3.bf16.msra.mxu0 %v3003_v45 }
0x1755   :  { %2950 = vmatprep.subr.bf16.mxu0 %v3095_v22 }
0x1758   :  { %2951 = vmatpush3.bf16.msra.mxu0 %v3004_v46 }
0x1759   :  { %2964 = vmatprep.subr.bf16.mxu0 %v3095_v22 }
0x1826   :  { %v2376_v48 = vpop.f32.mrb[32].mxu0 }
0x1827   :  { %v2377_v49 = vadd.f32 %v2700_v47, %v2376_v48  ;;  %v2946_v50 = vpop.f32.mrb[33].mxu0 }
0x1828   :  { %v2379_v51 = vpop.f32.mrb[34].mxu0 }
0x1829   :  { %3069 = vtanh.f32 %v2377_v49  ;;  %v2947_v52 = vpop.f32.mrb[35].mxu0 }
0x1833   :  { %v3070_v53 = vpop.eup %3069 }
0x1834   :  { %v2388_v54 = vpack.c.bf16 %v3070_v53, %v3070_v53 }
0x1836   :  { %2953 = vmatmul.mubr.msk.bf16.vlgmr.msra.gmra.mrb[36].mxu0 %vm93_vm0, %v2388_v54 }
0x1837   :  { %2968 = vmatprep.mubr.msk.bf16.mxu0 %vm3096_vm1, %v3095_v22  ;;  %2965 = vmatpush3.bf16.msra.mxu0 %v3007_v1 }
0x1838   :  { %2966 = vmatprep.subr.bf16.mxu0 %v3095_v22  ;;  %v2712_v22 = vld [vmem:[%s3691_s24] ss:$0 sm:$0xff] }
0x183b   :  { %2967 = vmatpush3.bf16.msra.mxu0 %v3008_v2 }
0x1909   :  { %v2444_v58 = vpop.f32.mrb[36].mxu0 }
0x190a   :  { %v2445_v59 = vadd.f32 %v2704_v57, %v2444_v58  ;;  %v2954_v60 = vpop.f32.mrb[37].mxu0 }
0x190b   :  { %v2447_v61 = vpop.f32.mrb[38].mxu0 }
0x190c   :  { %v2450_v62 = vmax.f32 %v2445_v59, 0.0  ;;  %v2955_v63 = vpop.f32.mrb[39].mxu0 }
0x190e   :  { %v2456_v0 = vpack.c.bf16 %v2450_v62, %v2450_v62 }
0x1910   :  { %2961 = vmatmul.mubr.msk.bf16.vlgmr.msra.gmra.mrb[32].mxu1 %vm93_vm0, %v2456_v0 }
0x19e3   :  { %v2512_v4 = vpop.f32.mrb[32].mxu1 }
0x19e4   :  { %v2513_v5 = vadd.f32 %v2708_v3, %v2512_v4  ;;  %v2962_v6 = vpop.f32.mrb[33].mxu1 }
0x19e5   :  { %v2515_v7 = vpop.f32.mrb[34].mxu1 }
0x19e6   :  { %v2518_v8 = vmax.f32 %v2513_v5, 0.0  ;;  %v2963_v9 = vpop.f32.mrb[35].mxu1 }
0x19e8   :  { %v2523_v10 = vpack.c.bf16 %v2518_v8, %v2518_v8 }
0x19ea   :  { %2969 = vmatmul.mubr.msk.bf16.vlgmr.msra.gmra.mrb[40].mxu0 %vm93_vm0, %v2523_v10 }
0x1abd   :  { %v2580_v11 = vpop.f32.mrb[40].mxu0 }
0x1abe   :  { %v2581_v12 = vadd.f32 %v2712_v22, %v2580_v11  ;;  %v2970_v13 = vpop.f32.mrb[41].mxu0 }
0x1abf   :  { %v2583_v38 = vpop.f32.mrb[42].mxu0 }
0x1ac0   :  { %v2971_v37 = vpop.f32.mrb[43].mxu0  ;;  %2587 = vst.msk [vmem:[#allocation4] sm:$0x3] %vm2586_vm8, %v2581_v12 }
0x1ac1   :  { %3082 = shalt.err (!%p3079_p4)
}
0x1ac2   :  { %s3083_s24 = scalar_lea.hbm %s3692_s25, 32 }
0x1ac3   :  { %p3084_p5 = scmp.ne.s32.totalorder %s3692_s25, %s3083_s24  ;;  %p3087_p6 = scmp.lt.u32.totalorder %s3083_s24, %s3692_s25 }
0x1ac5   :  { %p3089_p7 = pnand %p3087_p6, %p3084_p5 }
0x1ac7   :  { %3092 = shalt.err (!%p3089_p7)
}
0x1ac8   :  { %2597 = dma.vmem_to_hbm [thread:$0]  %s2595_s23, 32, %s3692_s25, [#allocation5]  }
0x1ac9   :  { %3093 = dma.done.wait [#allocation5], 32  }
0x1aca   :  { %3094 = vsyncadd [#allocation5], 4294967264 }
0x1acb   :  { %2601 = vsyncpa [#allocation5], 1 }

</bundles_post_ra>
